<compile_context>
chip_gen: v6e
topology: v6e:2x2x1
jax: 0.10.0
libtpu: 0.0.40
codegen_flags: <defaults>
</compile_context>

<pallas_src>
import math

import jax
import jax.numpy as jnp
from jax import lax
from jax.experimental import pallas as pl
from jax.experimental.pallas import tpu as pltpu

EPS = 1e-5  # nn.BatchNorm2d default eps

# tap order (du, dv) == (kh-1, kw-1), matching the weight re-layout below
_TAPS = tuple((du, dv) for du in (-1, 0, 1) for dv in (-1, 0, 1))

_VMEM_LIMIT_CACHE = []


def _vmem_limit():
    """Generation-aware scoped-VMEM limit (v5e/v6e: 128 MiB, v7x: 64 MiB)."""
    if not _VMEM_LIMIT_CACHE:
        try:
            info = pltpu.get_tpu_info()
            lim = min(int(info.vmem_capacity_bytes) * 3 // 4, 100 * 1024 * 1024)
        except Exception:
            lim = 48 * 1024 * 1024
        _VMEM_LIMIT_CACHE.append(lim)
    return _VMEM_LIMIT_CACHE[0]


def _round_up(x, m):
    return ((x + m - 1) // m) * m


def _column_masks(H, W):
    """(2, H*W) masks: row 0 kills w==0 (dv=-1 taps), row 1 kills w==W-1."""
    w_idx = jnp.arange(H * W, dtype=jnp.int32) % W
    left = (w_idx != 0).astype(jnp.float32)
    right = (w_idx != W - 1).astype(jnp.float32)
    return jnp.stack([left, right], axis=0)


# ---------------------------------------------------------------------------
# Pallas kernels
# ---------------------------------------------------------------------------
def _make_conv1_kernel(H, W, CP, Chid):
    """BN(batch stats) + PReLU + 3x3 conv + bias, plus fused BN2 partial stats.

    Channel-first: input block (CP, H*W), output block (Chid, H*W).
    """
    HW = H * W
    PAD = W + 1  # one-sided flat padding; covers every row overrun of any tap

    def kernel(alpha_ref, mean_ref, istd_ref, x_ref, cmask_ref, w_ref, b_ref,
               h_ref, st_ref, ypad_ref, patch_ref):
        a = alpha_ref[0, 0]
        x = x_ref[0]                                     # (CP, HW) lane-dense
        y = (x - mean_ref[...]) * istd_ref[...]          # BN normalize
        y = jnp.where(y >= 0.0, y, a * y)                # PReLU

        # Zero-padded flat spatial axis (row stride = W): tap (du, dv) is a
        # lane-shifted window read at offset du*W + dv.  Row overruns land in
        # the zero padding; only dv = +/-1 taps need a 1-column mask.
        ypad_ref[...] = jnp.zeros_like(ypad_ref)
        ypad_ref[:, PAD:PAD + HW] = y

        for t, (du, dv) in enumerate(_TAPS):
            s = PAD + du * W + dv
            p = ypad_ref[:, s:s + HW]
            if dv == -1:
                p = p * cmask_ref[0:1, :]
            elif dv == 1:
                p = p * cmask_ref[1:2, :]
            patch_ref[t * CP:(t + 1) * CP, :] = p        # sublane-aligned store

        # Single fused MXU dot, K = 9*CP (instead of 9 K=C dots + 8 VPU adds).
        acc = jnp.dot(w_ref[...], patch_ref[...],
                      preferred_element_type=jnp.float32)
        acc = acc + b_ref[...]                           # (Chid, HW)
        h_ref[0] = acc

        # Fused per-image BN2 partial statistics (sum, sum of squares).
        st_ref[0, :, 0:1] = jnp.sum(acc, axis=1, keepdims=True)
        st_ref[0, :, 1:2] = jnp.sum(acc * acc, axis=1, keepdims=True)

    return kernel


def _make_conv2_sc_kernel(H, W, CPH, CPX, Cout):
    """BN + PReLU + 3x3 conv + fused 1x1 shortcut conv + fused biases."""
    HW = H * W
    PAD = W + 1

    def kernel(alpha_ref, mean_ref, istd_ref, h_ref, x_ref, cmask_ref,
               w_ref, wsc_ref, b_ref, o_ref, ypad_ref, patch_ref):
        a = alpha_ref[0, 0]
        h = h_ref[0]                                     # (CPH, HW)
        y = (h - mean_ref[...]) * istd_ref[...]
        y = jnp.where(y >= 0.0, y, a * y)

        ypad_ref[...] = jnp.zeros_like(ypad_ref)
        ypad_ref[:, PAD:PAD + HW] = y
        for t, (du, dv) in enumerate(_TAPS):
            s = PAD + du * W + dv
            p = ypad_ref[:, s:s + HW]
            if dv == -1:
                p = p * cmask_ref[0:1, :]
            elif dv == 1:
                p = p * cmask_ref[1:2, :]
            patch_ref[t * CPH:(t + 1) * CPH, :] = p

        acc = jnp.dot(w_ref[...], patch_ref[...],
                      preferred_element_type=jnp.float32)     # (Cout, HW)
        # fused 1x1 learnable shortcut on the raw (un-normalized) input
        acc = acc + jnp.dot(wsc_ref[...], x_ref[0],
                            preferred_element_type=jnp.float32)
        o_ref[0] = acc + b_ref[...]                      # lane-dense NCHW output

    return kernel


# ---------------------------------------------------------------------------
# pallas_call wrappers
# ---------------------------------------------------------------------------
def bn_prelu_conv3x3(x_cf, mean, istd, alpha, cmask, w_mat, b, H, W):
    N, CP, HW = x_cf.shape
    Chid = w_mat.shape[0]
    kern = _make_conv1_kernel(H, W, CP, Chid)
    cost = pl.CostEstimate(
        flops=int(2 * N * HW * 9 * CP * Chid + 6 * N * CP * HW),
        transcendentals=0,
        bytes_accessed=int(4 * (x_cf.size + N * Chid * HW + N * Chid * 2
                                + w_mat.size + b.size + cmask.size)))
    return pl.pallas_call(
        kern,
        out_shape=(jax.ShapeDtypeStruct((N, Chid, HW), jnp.float32),
                   jax.ShapeDtypeStruct((N, Chid, 2), jnp.float32)),
        grid=(N,),
        in_specs=[
            pl.BlockSpec(memory_space=pltpu.MemorySpace.SMEM),   # PReLU alpha
            pl.BlockSpec((CP, 1), lambda n: (0, 0)),             # BN1 mean
            pl.BlockSpec((CP, 1), lambda n: (0, 0)),             # BN1 1/std
            pl.BlockSpec((1, CP, HW), lambda n: (n, 0, 0)),      # input (C, HW)
            pl.BlockSpec((2, HW), lambda n: (0, 0)),             # column masks
            pl.BlockSpec((Chid, 9 * CP), lambda n: (0, 0)),      # conv1 weights
            pl.BlockSpec((Chid, 1), lambda n: (0, 0)),           # conv1 bias
        ],
        out_specs=(pl.BlockSpec((1, Chid, HW), lambda n: (n, 0, 0)),
                   pl.BlockSpec((1, Chid, 2), lambda n: (n, 0, 0))),
        scratch_shapes=[pltpu.VMEM((CP, HW + 2 * (W + 1)), jnp.float32),
                        pltpu.VMEM((9 * CP, HW), jnp.float32)],
        compiler_params=pltpu.CompilerParams(
            dimension_semantics=("parallel",),
            vmem_limit_bytes=_vmem_limit()),
        cost_estimate=cost,
    )(alpha, mean, istd, x_cf, cmask, w_mat, b)


def bn_prelu_conv3x3_shortcut(h_cf, x_cf, mean, istd, alpha, cmask,
                              w_mat, wsc, b, H, W):
    N, CPH, HW = h_cf.shape
    CPX = x_cf.shape[1]
    Cout = w_mat.shape[0]
    kern = _make_conv2_sc_kernel(H, W, CPH, CPX, Cout)
    cost = pl.CostEstimate(
        flops=int(2 * N * HW * (9 * CPH + CPX) * Cout + 6 * N * CPH * HW),
        transcendentals=0,
        bytes_accessed=int(4 * (h_cf.size + x_cf.size + N * Cout * HW
                                + w_mat.size + wsc.size + b.size + cmask.size)))
    return pl.pallas_call(
        kern,
        out_shape=jax.ShapeDtypeStruct((N, Cout, HW), jnp.float32),
        grid=(N,),
        in_specs=[
            pl.BlockSpec(memory_space=pltpu.MemorySpace.SMEM),   # PReLU alpha
            pl.BlockSpec((CPH, 1), lambda n: (0, 0)),            # BN2 mean
            pl.BlockSpec((CPH, 1), lambda n: (0, 0)),            # BN2 1/std
            pl.BlockSpec((1, CPH, HW), lambda n: (n, 0, 0)),     # h1 (C, HW)
            pl.BlockSpec((1, CPX, HW), lambda n: (n, 0, 0)),     # raw x (C, HW)
            pl.BlockSpec((2, HW), lambda n: (0, 0)),             # column masks
            pl.BlockSpec((Cout, 9 * CPH), lambda n: (0, 0)),     # conv2 weights
            pl.BlockSpec((Cout, CPX), lambda n: (0, 0)),         # shortcut w
            pl.BlockSpec((Cout, 1), lambda n: (0, 0)),           # fused bias
        ],
        out_specs=pl.BlockSpec((1, Cout, HW), lambda n: (n, 0, 0)),
        scratch_shapes=[pltpu.VMEM((CPH, HW + 2 * (W + 1)), jnp.float32),
                        pltpu.VMEM((9 * CPH, HW), jnp.float32)],
        compiler_params=pltpu.CompilerParams(
            dimension_semantics=("parallel",),
            vmem_limit_bytes=_vmem_limit()),
        cost_estimate=cost,
    )(alpha, mean, istd, h_cf, x_cf, cmask, w_mat, wsc, b)


# ---------------------------------------------------------------------------
# Parameter init (mirrors GenBlock._initialize + PyTorch defaults)
# ---------------------------------------------------------------------------
def xavier_uniform(key, shape, gain):
    recf = math.prod(shape[2:]) if len(shape) > 2 else 1
    fan_out = shape[0] * recf
    fan_in = shape[1] * recf
    bound = gain * math.sqrt(6.0 / (fan_in + fan_out))
    return jax.random.uniform(key, shape, jnp.float32, -bound, bound)


def conv_bias(key, cout, fan_in):
    bound = 1.0 / math.sqrt(fan_in)
    return jax.random.uniform(key, (1, cout), jnp.float32, -bound, bound)


def init_params(key, in_ch, out_ch, hidden_ch):
    ks = jax.random.split(key, 6)
    return {
        "w1": xavier_uniform(ks[0], (hidden_ch, in_ch, 3, 3), math.sqrt(2.0)),
        "b1": conv_bias(ks[1], hidden_ch, in_ch * 9),
        "w2": xavier_uniform(ks[2], (out_ch, hidden_ch, 3, 3), math.sqrt(2.0)),
        "b2": conv_bias(ks[3], out_ch, hidden_ch * 9),
        "wsc": xavier_uniform(ks[4], (out_ch, in_ch, 1, 1), 1.0),
        "bsc": conv_bias(ks[5], out_ch, in_ch),
        "alpha1": jnp.full((1, 1), 0.25, jnp.float32),   # nn.PReLU default
        "alpha2": jnp.full((1, 1), 0.25, jnp.float32),
    }


def prepare_params(p):
    """One-time weight re-layout (done OFF the per-forward hot path).

    Conv weights become (Cout, 9*Cpad) with column (kh*3+kw)*Cpad + cin; input
    channels are zero-padded to a multiple of 8 so the per-tap patch writes in
    the kernels are sublane-tile aligned.
    """
    chid, cin = p["w1"].shape[0], p["w1"].shape[1]
    cout = p["w2"].shape[0]
    cp1 = _round_up(cin, 8)
    cp2 = _round_up(chid, 8)

    w1 = jnp.transpose(p["w1"], (0, 2, 3, 1))            # (chid, 3, 3, cin)
    w1 = jnp.pad(w1, ((0, 0), (0, 0), (0, 0), (0, cp1 - cin)))
    w2 = jnp.transpose(p["w2"], (0, 2, 3, 1))            # (cout, 3, 3, chid)
    w2 = jnp.pad(w2, ((0, 0), (0, 0), (0, 0), (0, cp2 - chid)))
    wsc = jnp.pad(p["wsc"].reshape(cout, cin), ((0, 0), (0, cp1 - cin)))

    return {
        "w1": w1.reshape(chid, 9 * cp1),
        "b1": p["b1"].reshape(chid, 1),
        "w2": w2.reshape(cout, 9 * cp2),
        "wsc": wsc,                                       # (cout, cp1)
        "b2sc": (p["b2"] + p["bsc"]).reshape(cout, 1),    # fused conv2+shortcut bias
        "alpha1": p["alpha1"],
        "alpha2": p["alpha2"],
    }


# ---------------------------------------------------------------------------
# GenBlock forward (upsample=False, learnable 1x1 shortcut)
# ---------------------------------------------------------------------------
def gen_block_forward(x_nchw, q):
    N, Cin, H, W = x_nchw.shape
    HW = H * W          # lane axis; multiple of 128 keeps stores unmasked
    Chid = q["w1"].shape[0]
    Cout = q["w2"].shape[0]
    CP1 = q["w1"].shape[1] // 9
    CP2 = q["w2"].shape[1] // 9
    m = N * H * W

    x = x_nchw.astype(jnp.float32)
    # NCHW -> channel-first lane-dense (N, C, H*W) is a free reshape;
    # zero-pad channels to a sublane multiple (weight columns there are zero).
    x_cf = jnp.pad(x.reshape(N, Cin, HW), ((0, 0), (0, CP1 - Cin), (0, 0)))

    # BN1 batch statistics: plain two-pass JAX reduction over the raw input
    # (XLA fuses it; no extra kernel pass over a padded activation copy).
    mean1 = jnp.mean(x, axis=(0, 2, 3))
    var1 = jnp.mean(jnp.square(x - mean1.reshape(1, Cin, 1, 1)), axis=(0, 2, 3))
    mean1p = jnp.pad(mean1, (0, CP1 - Cin)).reshape(CP1, 1)
    istd1p = jnp.pad(lax.rsqrt(var1 + EPS), (0, CP1 - Cin)).reshape(CP1, 1)

    cmask = _column_masks(H, W)

    h1, st = bn_prelu_conv3x3(x_cf, mean1p, istd1p, q["alpha1"], cmask,
                              q["w1"], q["b1"], H, W)

    # BN2 statistics were accumulated per-image inside conv1; finish the tiny
    # (N, Chid, 2) reduction here.  NOTE: one-pass var = E[x^2] - mean^2 is
    # fine in f32 for these normalized activations; use a two-pass reduce over
    # h1 if inputs are badly conditioned.
    sums = jnp.sum(st, axis=0)                           # (Chid, 2)
    mean2 = sums[:, 0:1] / m
    var2 = jnp.maximum(sums[:, 1:2] / m - mean2 * mean2, 0.0)
    istd2 = lax.rsqrt(var2 + EPS)
    mean2p = jnp.pad(mean2, ((0, CP2 - Chid), (0, 0)))
    istd2p = jnp.pad(istd2, ((0, CP2 - Chid), (0, 0)))
    h1p = h1 if Chid == CP2 else jnp.pad(h1, ((0, 0), (0, CP2 - Chid), (0, 0)))

    out = bn_prelu_conv3x3_shortcut(h1p, x_cf, mean2p, istd2p, q["alpha2"],
                                    cmask, q["w2"], q["wsc"], q["b2sc"], H, W)
    return out.reshape(N, Cout, H, W)                    # already NCHW


# ---------------------------------------------------------------------------
# Pure-JAX reference (lax.conv) for correctness checking
# ---------------------------------------------------------------------------
def reference_forward(x_nchw, p):
    x = jnp.transpose(x_nchw, (0, 2, 3, 1)).astype(jnp.float32)

    def bn_prelu_ref(h, a):
        mean = h.mean(axis=(0, 1, 2), keepdims=True)
        var = ((h - mean) ** 2).mean(axis=(0, 1, 2), keepdims=True)
        y = (h - mean) * lax.rsqrt(var + EPS)
        return jnp.where(y >= 0, y, a * y)

    def conv(h, w, b, pad):
        w_hwio = jnp.transpose(w, (2, 3, 1, 0))
        out = lax.conv_general_dilated(
            h, w_hwio, (1, 1), ((pad, pad), (pad, pad)),
            dimension_numbers=("NHWC", "HWIO", "NHWC"))
        return out + b.reshape(1, 1, 1, -1)

    h = bn_prelu_ref(x, p["alpha1"][0, 0])
    h = conv(h, p["w1"], p["b1"], 1)
    h = bn_prelu_ref(h, p["alpha2"][0, 0])
    h = conv(h, p["w2"], p["b2"], 1)
    sc = conv(x, p["wsc"], p["bsc"], 0)
    return jnp.transpose(h + sc, (0, 3, 1, 2))


if __name__ == "__main__":
    key = jax.random.PRNGKey(0)
    k_x, k_p = jax.random.split(key)

    N, Cin, Cout, H, W = 2, 4, 8, 16, 16
    x = jax.random.normal(k_x, (N, Cin, H, W), jnp.float32)
    params = init_params(k_p, Cin, Cout, hidden_ch=Cout)
    prepped = prepare_params(params)     # weight re-layout done once

    fwd = jax.jit(gen_block_forward)
    out = jax.block_until_ready(fwd(x, prepped))
    ref = jax.block_until_ready(reference_forward(x, params))

    assert out.shape == (N, Cout, H, W), out.shape
    err = float(jnp.max(jnp.abs(out - ref)))
    assert jnp.allclose(out, ref, rtol=1e-3, atol=1e-3), err
    print("KERNEL_OK")
</pallas_src>

<mosaic_0001>
module attributes {stable_mosaic.version = 11 : i64} {
  func.func @kernel(%arg0: i32, %arg1: memref<1x1xf32, #tpu.memory_space<smem>>, %arg2: memref<8x1xf32, #tpu.memory_space<vmem>>, %arg3: memref<8x1xf32, #tpu.memory_space<vmem>>, %arg4: memref<1x8x256xf32, #tpu.memory_space<vmem>>, %arg5: memref<2x256xf32, #tpu.memory_space<vmem>>, %arg6: memref<8x72xf32, #tpu.memory_space<vmem>>, %arg7: memref<8x1xf32, #tpu.memory_space<vmem>>, %arg8: memref<1x8x256xf32, #tpu.memory_space<vmem>>, %arg9: memref<1x8x2xf32, #tpu.memory_space<vmem>>, %arg10: memref<8x290xf32, #tpu.memory_space<vmem>>, %arg11: memref<72x256xf32, #tpu.memory_space<vmem>>) attributes {dimension_semantics = [#tpu.dimension_semantics<parallel>], iteration_bounds = array<i64: 2>, scalar_prefetch = 0 : i64, scratch_operands = 2 : i64, tpu.core_type = #tpu.core_type<tc>, window_params = [{transform_indices = @transform_0, window_bounds = array<i64: 1, 1>}, {pipeline_mode = #tpu.pipeline_mode<synchronous>, transform_indices = @transform_1, window_bounds = array<i64: 8, 1>}, {pipeline_mode = #tpu.pipeline_mode<synchronous>, transform_indices = @transform_2, window_bounds = array<i64: 8, 1>}, {transform_indices = @transform_3, window_bounds = array<i64: 1, 8, 256>}, {pipeline_mode = #tpu.pipeline_mode<synchronous>, transform_indices = @transform_4, window_bounds = array<i64: 2, 256>}, {pipeline_mode = #tpu.pipeline_mode<synchronous>, transform_indices = @transform_5, window_bounds = array<i64: 8, 72>}, {pipeline_mode = #tpu.pipeline_mode<synchronous>, transform_indices = @transform_6, window_bounds = array<i64: 8, 1>}, {transform_indices = @transform_7, window_bounds = array<i64: 1, 8, 256>}, {transform_indices = @transform_8, window_bounds = array<i64: 1, 8, 2>}]} {
    %c0 = arith.constant 0 : index
    %c0_0 = arith.constant 0 : index
    %0 = memref.load %arg1[%c0, %c0_0] : memref<1x1xf32, #tpu.memory_space<smem>>
    %c0_1 = arith.constant 0 : index
    %c0_2 = arith.constant 0 : index
    %c0_3 = arith.constant 0 : index
    %1 = vector.load %arg4[%c0_1, %c0_2, %c0_3] : memref<1x8x256xf32, #tpu.memory_space<vmem>>, vector<1x8x256xf32>
    %2 = vector.shape_cast %1 : vector<1x8x256xf32> to vector<8x256xf32>
    %c0_4 = arith.constant 0 : index
    %c0_5 = arith.constant 0 : index
    %3 = vector.load %arg2[%c0_4, %c0_5] : memref<8x1xf32, #tpu.memory_space<vmem>>, vector<8x1xf32>
    %4 = vector.broadcast %3 : vector<8x1xf32> to vector<8x256xf32>
    %5 = arith.subf %2, %4 : vector<8x256xf32>
    %c0_6 = arith.constant 0 : index
    %c0_7 = arith.constant 0 : index
    %6 = vector.load %arg3[%c0_6, %c0_7] : memref<8x1xf32, #tpu.memory_space<vmem>>, vector<8x1xf32>
    %7 = vector.broadcast %6 : vector<8x1xf32> to vector<8x256xf32>
    %8 = arith.mulf %5, %7 : vector<8x256xf32>
    %cst = arith.constant 0.000000e+00 : f32
    %9 = vector.broadcast %cst : f32 to vector<8x256xf32>
    %10 = arith.cmpf oge, %8, %9 : vector<8x256xf32>
    %11 = vector.broadcast %0 : f32 to vector<8x256xf32>
    %12 = arith.mulf %11, %8 : vector<8x256xf32>
    %13 = arith.select %10, %8, %12 : vector<8x256xi1>, vector<8x256xf32>
    %cst_8 = arith.constant 0.000000e+00 : f32
    %14 = vector.broadcast %cst_8 : f32 to vector<8x290xf32>
    %c0_9 = arith.constant 0 : index
    %c0_10 = arith.constant 0 : index
    %15 = vector.load %arg10[%c0_9, %c0_10] : memref<8x290xf32, #tpu.memory_space<vmem>>, vector<8x290xf32>
    tpu.vector_store %arg10[%c0_9, %c0_10], %14 {strides = array<i32>} : memref<8x290xf32, #tpu.memory_space<vmem>>, vector<8x290xf32>,
    %c0_11 = arith.constant 0 : index
    %c17 = arith.constant 17 : index
    %16 = vector.load %arg10[%c0_11, %c17] : memref<8x290xf32, #tpu.memory_space<vmem>>, vector<8x256xf32>
    tpu.vector_store %arg10[%c0_11, %c17], %13 {strides = array<i32>} : memref<8x290xf32, #tpu.memory_space<vmem>>, vector<8x256xf32>,
    %c0_12 = arith.constant 0 : index
    %c0_13 = arith.constant 0 : index
    %17 = vector.load %arg10[%c0_12, %c0_13] : memref<8x290xf32, #tpu.memory_space<vmem>>, vector<8x256xf32>
    %c0_14 = arith.constant 0 : index
    %c0_15 = arith.constant 0 : index
    %18 = vector.load %arg5[%c0_14, %c0_15] : memref<2x256xf32, #tpu.memory_space<vmem>>, vector<1x256xf32>
    %19 = vector.broadcast %18 : vector<1x256xf32> to vector<8x256xf32>
    %20 = arith.mulf %17, %19 : vector<8x256xf32>
    %c0_16 = arith.constant 0 : index
    %c0_17 = arith.constant 0 : index
    %21 = vector.load %arg11[%c0_16, %c0_17] : memref<72x256xf32, #tpu.memory_space<vmem>>, vector<8x256xf32>
    tpu.vector_store %arg11[%c0_16, %c0_17], %20 {strides = array<i32>} : memref<72x256xf32, #tpu.memory_space<vmem>>, vector<8x256xf32>,
    %c0_18 = arith.constant 0 : index
    %c1 = arith.constant 1 : index
    %22 = vector.load %arg10[%c0_18, %c1] : memref<8x290xf32, #tpu.memory_space<vmem>>, vector<8x256xf32>
    %c8 = arith.constant 8 : index
    %c0_19 = arith.constant 0 : index
    %23 = vector.load %arg11[%c8, %c0_19] : memref<72x256xf32, #tpu.memory_space<vmem>>, vector<8x256xf32>
    tpu.vector_store %arg11[%c8, %c0_19], %22 {strides = array<i32>} : memref<72x256xf32, #tpu.memory_space<vmem>>, vector<8x256xf32>,
    %c0_20 = arith.constant 0 : index
    %c2 = arith.constant 2 : index
    %24 = vector.load %arg10[%c0_20, %c2] : memref<8x290xf32, #tpu.memory_space<vmem>>, vector<8x256xf32>
    %c1_21 = arith.constant 1 : index
    %c0_22 = arith.constant 0 : index
    %25 = vector.load %arg5[%c1_21, %c0_22] : memref<2x256xf32, #tpu.memory_space<vmem>>, vector<1x256xf32>
    %26 = vector.broadcast %25 : vector<1x256xf32> to vector<8x256xf32>
    %27 = arith.mulf %24, %26 : vector<8x256xf32>
    %c16 = arith.constant 16 : index
    %c0_23 = arith.constant 0 : index
    %28 = vector.load %arg11[%c16, %c0_23] : memref<72x256xf32, #tpu.memory_space<vmem>>, vector<8x256xf32>
    tpu.vector_store %arg11[%c16, %c0_23], %27 {strides = array<i32>} : memref<72x256xf32, #tpu.memory_space<vmem>>, vector<8x256xf32>,
    %c0_24 = arith.constant 0 : index
    %c16_25 = arith.constant 16 : index
    %29 = vector.load %arg10[%c0_24, %c16_25] : memref<8x290xf32, #tpu.memory_space<vmem>>, vector<8x256xf32>
    %c0_26 = arith.constant 0 : index
    %c0_27 = arith.constant 0 : index
    %30 = vector.load %arg5[%c0_26, %c0_27] : memref<2x256xf32, #tpu.memory_space<vmem>>, vector<1x256xf32>
    %31 = vector.broadcast %30 : vector<1x256xf32> to vector<8x256xf32>
    %32 = arith.mulf %29, %31 : vector<8x256xf32>
    %c24 = arith.constant 24 : index
    %c0_28 = arith.constant 0 : index
    %33 = vector.load %arg11[%c24, %c0_28] : memref<72x256xf32, #tpu.memory_space<vmem>>, vector<8x256xf32>
    tpu.vector_store %arg11[%c24, %c0_28], %32 {strides = array<i32>} : memref<72x256xf32, #tpu.memory_space<vmem>>, vector<8x256xf32>,
    %c0_29 = arith.constant 0 : index
    %c17_30 = arith.constant 17 : index
    %34 = vector.load %arg10[%c0_29, %c17_30] : memref<8x290xf32, #tpu.memory_space<vmem>>, vector<8x256xf32>
    %c32 = arith.constant 32 : index
    %c0_31 = arith.constant 0 : index
    %35 = vector.load %arg11[%c32, %c0_31] : memref<72x256xf32, #tpu.memory_space<vmem>>, vector<8x256xf32>
    tpu.vector_store %arg11[%c32, %c0_31], %34 {strides = array<i32>} : memref<72x256xf32, #tpu.memory_space<vmem>>, vector<8x256xf32>,
    %c0_32 = arith.constant 0 : index
    %c18 = arith.constant 18 : index
    %36 = vector.load %arg10[%c0_32, %c18] : memref<8x290xf32, #tpu.memory_space<vmem>>, vector<8x256xf32>
    %c1_33 = arith.constant 1 : index
    %c0_34 = arith.constant 0 : index
    %37 = vector.load %arg5[%c1_33, %c0_34] : memref<2x256xf32, #tpu.memory_space<vmem>>, vector<1x256xf32>
    %38 = vector.broadcast %37 : vector<1x256xf32> to vector<8x256xf32>
    %39 = arith.mulf %36, %38 : vector<8x256xf32>
    %c40 = arith.constant 40 : index
    %c0_35 = arith.constant 0 : index
    %40 = vector.load %arg11[%c40, %c0_35] : memref<72x256xf32, #tpu.memory_space<vmem>>, vector<8x256xf32>
    tpu.vector_store %arg11[%c40, %c0_35], %39 {strides = array<i32>} : memref<72x256xf32, #tpu.memory_space<vmem>>, vector<8x256xf32>,
    %c0_36 = arith.constant 0 : index
    %c32_37 = arith.constant 32 : index
    %41 = vector.load %arg10[%c0_36, %c32_37] : memref<8x290xf32, #tpu.memory_space<vmem>>, vector<8x256xf32>
    %c0_38 = arith.constant 0 : index
    %c0_39 = arith.constant 0 : index
    %42 = vector.load %arg5[%c0_38, %c0_39] : memref<2x256xf32, #tpu.memory_space<vmem>>, vector<1x256xf32>
    %43 = vector.broadcast %42 : vector<1x256xf32> to vector<8x256xf32>
    %44 = arith.mulf %41, %43 : vector<8x256xf32>
    %c48 = arith.constant 48 : index
    %c0_40 = arith.constant 0 : index
    %45 = vector.load %arg11[%c48, %c0_40] : memref<72x256xf32, #tpu.memory_space<vmem>>, vector<8x256xf32>
    tpu.vector_store %arg11[%c48, %c0_40], %44 {strides = array<i32>} : memref<72x256xf32, #tpu.memory_space<vmem>>, vector<8x256xf32>,
    %c0_41 = arith.constant 0 : index
    %c33 = arith.constant 33 : index
    %46 = vector.load %arg10[%c0_41, %c33] : memref<8x290xf32, #tpu.memory_space<vmem>>, vector<8x256xf32>
    %c56 = arith.constant 56 : index
    %c0_42 = arith.constant 0 : index
    %47 = vector.load %arg11[%c56, %c0_42] : memref<72x256xf32, #tpu.memory_space<vmem>>, vector<8x256xf32>
    tpu.vector_store %arg11[%c56, %c0_42], %46 {strides = array<i32>} : memref<72x256xf32, #tpu.memory_space<vmem>>, vector<8x256xf32>,
    %c0_43 = arith.constant 0 : index
    %c34 = arith.constant 34 : index
    %48 = vector.load %arg10[%c0_43, %c34] : memref<8x290xf32, #tpu.memory_space<vmem>>, vector<8x256xf32>
    %c1_44 = arith.constant 1 : index
    %c0_45 = arith.constant 0 : index
    %49 = vector.load %arg5[%c1_44, %c0_45] : memref<2x256xf32, #tpu.memory_space<vmem>>, vector<1x256xf32>
    %50 = vector.broadcast %49 : vector<1x256xf32> to vector<8x256xf32>
    %51 = arith.mulf %48, %50 : vector<8x256xf32>
    %c64 = arith.constant 64 : index
    %c0_46 = arith.constant 0 : index
    %52 = vector.load %arg11[%c64, %c0_46] : memref<72x256xf32, #tpu.memory_space<vmem>>, vector<8x256xf32>
    tpu.vector_store %arg11[%c64, %c0_46], %51 {strides = array<i32>} : memref<72x256xf32, #tpu.memory_space<vmem>>, vector<8x256xf32>,
    %c0_47 = arith.constant 0 : index
    %c0_48 = arith.constant 0 : index
    %53 = vector.load %arg6[%c0_47, %c0_48] : memref<8x72xf32, #tpu.memory_space<vmem>>, vector<8x72xf32>
    %c0_49 = arith.constant 0 : index
    %c0_50 = arith.constant 0 : index
    %54 = vector.load %arg11[%c0_49, %c0_50] : memref<72x256xf32, #tpu.memory_space<vmem>>, vector<72x256xf32>
    %cst_51 = arith.constant dense<0.000000e+00> : vector<8x256xf32>
    %55 = tpu.matmul %53, %54, %cst_51 {dimension_numbers = #tpu.dot_dimension_numbers<[1], [0], [0], [1], [0, 0, 1, 1], [], []>} : vector<8x72xf32>, vector<72x256xf32>, vector<8x256xf32> -> vector<8x256xf32>
    %c0_52 = arith.constant 0 : index
    %c0_53 = arith.constant 0 : index
    %56 = vector.load %arg7[%c0_52, %c0_53] : memref<8x1xf32, #tpu.memory_space<vmem>>, vector<8x1xf32>
    %57 = vector.broadcast %56 : vector<8x1xf32> to vector<8x256xf32>
    %58 = arith.addf %55, %57 : vector<8x256xf32>
    %c0_54 = arith.constant 0 : index
    %c0_55 = arith.constant 0 : index
    %c0_56 = arith.constant 0 : index
    %59 = vector.load %arg8[%c0_54, %c0_55, %c0_56] : memref<1x8x256xf32, #tpu.memory_space<vmem>>, vector<1x8x256xf32>
    %60 = vector.shape_cast %59 : vector<1x8x256xf32> to vector<8x256xf32>
    %61 = vector.shape_cast %58 : vector<8x256xf32> to vector<1x8x256xf32>
    tpu.vector_store %arg8[%c0_54, %c0_55, %c0_56], %61 {strides = array<i32>} : memref<1x8x256xf32, #tpu.memory_space<vmem>>, vector<1x8x256xf32>,
    %cst_57 = arith.constant dense<0.000000e+00> : vector<8xf32>
    %62 = vector.multi_reduction <add>, %58, %cst_57 [1] : vector<8x256xf32> to vector<8xf32>
    %63 = vector.shape_cast %62 : vector<8xf32> to vector<8x1xf32>
    %c0_58 = arith.constant 0 : index
    %c0_59 = arith.constant 0 : index
    %c0_60 = arith.constant 0 : index
    %64 = vector.load %arg9[%c0_58, %c0_59, %c0_60] : memref<1x8x2xf32, #tpu.memory_space<vmem>>, vector<1x8x1xf32>
    %65 = vector.shape_cast %64 : vector<1x8x1xf32> to vector<8x1xf32>
    %66 = vector.shape_cast %63 : vector<8x1xf32> to vector<1x8x1xf32>
    tpu.vector_store %arg9[%c0_58, %c0_59, %c0_60], %66 {strides = array<i32>} : memref<1x8x2xf32, #tpu.memory_space<vmem>>, vector<1x8x1xf32>,
    %67 = arith.mulf %58, %58 : vector<8x256xf32>
    %cst_61 = arith.constant dense<0.000000e+00> : vector<8xf32>
    %68 = vector.multi_reduction <add>, %67, %cst_61 [1] : vector<8x256xf32> to vector<8xf32>
    %69 = vector.shape_cast %68 : vector<8xf32> to vector<8x1xf32>
    %c0_62 = arith.constant 0 : index
    %c0_63 = arith.constant 0 : index
    %c1_64 = arith.constant 1 : index
    %70 = vector.load %arg9[%c0_62, %c0_63, %c1_64] : memref<1x8x2xf32, #tpu.memory_space<vmem>>, vector<1x8x1xf32>
    %71 = vector.shape_cast %70 : vector<1x8x1xf32> to vector<8x1xf32>
    %72 = vector.shape_cast %69 : vector<8x1xf32> to vector<1x8x1xf32>
    tpu.vector_store %arg9[%c0_62, %c0_63, %c1_64], %72 {strides = array<i32>} : memref<1x8x2xf32, #tpu.memory_space<vmem>>, vector<1x8x1xf32>,
    return
  }
  func.func @transform_0(%arg0: i32) -> (i32, i32) {
    %c0_i32 = arith.constant 0 : i32
    %c0_i32_0 = arith.constant 0 : i32
    %c0_i32_1 = arith.constant 0 : i32
    return %c0_i32, %c0_i32_0 : i32, i32
  }
  func.func @transform_1(%arg0: i32) -> (i32, i32) {
    %c0_i32 = arith.constant 0 : i32
    %c0_i32_0 = arith.constant 0 : i32
    %c0_i32_1 = arith.constant 0 : i32
    return %c0_i32, %c0_i32_0 : i32, i32
  }
  func.func @transform_2(%arg0: i32) -> (i32, i32) {
    %c0_i32 = arith.constant 0 : i32
    %c0_i32_0 = arith.constant 0 : i32
    %c0_i32_1 = arith.constant 0 : i32
    return %c0_i32, %c0_i32_0 : i32, i32
  }
  func.func @transform_3(%arg0: i32) -> (i32, i32, i32) {
    %c0_i32 = arith.constant 0 : i32
    %c0_i32_0 = arith.constant 0 : i32
    %c0_i32_1 = arith.constant 0 : i32
    return %arg0, %c0_i32, %c0_i32_0 : i32, i32, i32
  }
  func.func @transform_4(%arg0: i32) -> (i32, i32) {
    %c0_i32 = arith.constant 0 : i32
    %c0_i32_0 = arith.constant 0 : i32
    %c0_i32_1 = arith.constant 0 : i32
    return %c0_i32, %c0_i32_0 : i32, i32
  }
  func.func @transform_5(%arg0: i32) -> (i32, i32) {
    %c0_i32 = arith.constant 0 : i32
    %c0_i32_0 = arith.constant 0 : i32
    %c0_i32_1 = arith.constant 0 : i32
    return %c0_i32, %c0_i32_0 : i32, i32
  }
  func.func @transform_6(%arg0: i32) -> (i32, i32) {
    %c0_i32 = arith.constant 0 : i32
    %c0_i32_0 = arith.constant 0 : i32
    %c0_i32_1 = arith.constant 0 : i32
    return %c0_i32, %c0_i32_0 : i32, i32
  }
  func.func @transform_7(%arg0: i32) -> (i32, i32, i32) {
    %c0_i32 = arith.constant 0 : i32
    %c0_i32_0 = arith.constant 0 : i32
    %c0_i32_1 = arith.constant 0 : i32
    return %arg0, %c0_i32, %c0_i32_0 : i32, i32, i32
  }
  func.func @transform_8(%arg0: i32) -> (i32, i32, i32) {
    %c0_i32 = arith.constant 0 : i32
    %c0_i32_0 = arith.constant 0 : i32
    %c0_i32_1 = arith.constant 0 : i32
    return %arg0, %c0_i32, %c0_i32_0 : i32, i32, i32
  }
}

module attributes {stable_mosaic.version = 11 : i64} {
  func.func @kernel(%arg0: i32, %arg1: memref<1x1xf32, #tpu.memory_space<smem>>, %arg2: memref<8x1xf32, #tpu.memory_space<vmem>>, %arg3: memref<8x1xf32, #tpu.memory_space<vmem>>, %arg4: memref<1x8x256xf32, #tpu.memory_space<vmem>>, %arg5: memref<1x8x256xf32, #tpu.memory_space<vmem>>, %arg6: memref<2x256xf32, #tpu.memory_space<vmem>>, %arg7: memref<8x72xf32, #tpu.memory_space<vmem>>, %arg8: memref<8x8xf32, #tpu.memory_space<vmem>>, %arg9: memref<8x1xf32, #tpu.memory_space<vmem>>, %arg10: memref<1x8x256xf32, #tpu.memory_space<vmem>>, %arg11: memref<8x290xf32, #tpu.memory_space<vmem>>, %arg12: memref<72x256xf32, #tpu.memory_space<vmem>>) attributes {dimension_semantics = [#tpu.dimension_semantics<parallel>], iteration_bounds = array<i64: 2>, scalar_prefetch = 0 : i64, scratch_operands = 2 : i64, tpu.core_type = #tpu.core_type<tc>, window_params = [{transform_indices = @transform_0, window_bounds = array<i64: 1, 1>}, {pipeline_mode = #tpu.pipeline_mode<synchronous>, transform_indices = @transform_1, window_bounds = array<i64: 8, 1>}, {pipeline_mode = #tpu.pipeline_mode<synchronous>, transform_indices = @transform_2, window_bounds = array<i64: 8, 1>}, {transform_indices = @transform_3, window_bounds = array<i64: 1, 8, 256>}, {transform_indices = @transform_4, window_bounds = array<i64: 1, 8, 256>}, {pipeline_mode = #tpu.pipeline_mode<synchronous>, transform_indices = @transform_5, window_bounds = array<i64: 2, 256>}, {pipeline_mode = #tpu.pipeline_mode<synchronous>, transform_indices = @transform_6, window_bounds = array<i64: 8, 72>}, {pipeline_mode = #tpu.pipeline_mode<synchronous>, transform_indices = @transform_7, window_bounds = array<i64: 8, 8>}, {pipeline_mode = #tpu.pipeline_mode<synchronous>, transform_indices = @transform_8, window_bounds = array<i64: 8, 1>}, {transform_indices = @transform_9, window_bounds = array<i64: 1, 8, 256>}]} {
    %c0 = arith.constant 0 : index
    %c0_0 = arith.constant 0 : index
    %0 = memref.load %arg1[%c0, %c0_0] : memref<1x1xf32, #tpu.memory_space<smem>>
    %c0_1 = arith.constant 0 : index
    %c0_2 = arith.constant 0 : index
    %c0_3 = arith.constant 0 : index
    %1 = vector.load %arg4[%c0_1, %c0_2, %c0_3] : memref<1x8x256xf32, #tpu.memory_space<vmem>>, vector<1x8x256xf32>
    %2 = vector.shape_cast %1 : vector<1x8x256xf32> to vector<8x256xf32>
    %c0_4 = arith.constant 0 : index
    %c0_5 = arith.constant 0 : index
    %3 = vector.load %arg2[%c0_4, %c0_5] : memref<8x1xf32, #tpu.memory_space<vmem>>, vector<8x1xf32>
    %4 = vector.broadcast %3 : vector<8x1xf32> to vector<8x256xf32>
    %5 = arith.subf %2, %4 : vector<8x256xf32>
    %c0_6 = arith.constant 0 : index
    %c0_7 = arith.constant 0 : index
    %6 = vector.load %arg3[%c0_6, %c0_7] : memref<8x1xf32, #tpu.memory_space<vmem>>, vector<8x1xf32>
    %7 = vector.broadcast %6 : vector<8x1xf32> to vector<8x256xf32>
    %8 = arith.mulf %5, %7 : vector<8x256xf32>
    %cst = arith.constant 0.000000e+00 : f32
    %9 = vector.broadcast %cst : f32 to vector<8x256xf32>
    %10 = arith.cmpf oge, %8, %9 : vector<8x256xf32>
    %11 = vector.broadcast %0 : f32 to vector<8x256xf32>
    %12 = arith.mulf %11, %8 : vector<8x256xf32>
    %13 = arith.select %10, %8, %12 : vector<8x256xi1>, vector<8x256xf32>
    %cst_8 = arith.constant 0.000000e+00 : f32
    %14 = vector.broadcast %cst_8 : f32 to vector<8x290xf32>
    %c0_9 = arith.constant 0 : index
    %c0_10 = arith.constant 0 : index
    %15 = vector.load %arg11[%c0_9, %c0_10] : memref<8x290xf32, #tpu.memory_space<vmem>>, vector<8x290xf32>
    tpu.vector_store %arg11[%c0_9, %c0_10], %14 {strides = array<i32>} : memref<8x290xf32, #tpu.memory_space<vmem>>, vector<8x290xf32>,
    %c0_11 = arith.constant 0 : index
    %c17 = arith.constant 17 : index
    %16 = vector.load %arg11[%c0_11, %c17] : memref<8x290xf32, #tpu.memory_space<vmem>>, vector<8x256xf32>
    tpu.vector_store %arg11[%c0_11, %c17], %13 {strides = array<i32>} : memref<8x290xf32, #tpu.memory_space<vmem>>, vector<8x256xf32>,
    %c0_12 = arith.constant 0 : index
    %c0_13 = arith.constant 0 : index
    %17 = vector.load %arg11[%c0_12, %c0_13] : memref<8x290xf32, #tpu.memory_space<vmem>>, vector<8x256xf32>
    %c0_14 = arith.constant 0 : index
    %c0_15 = arith.constant 0 : index
    %18 = vector.load %arg6[%c0_14, %c0_15] : memref<2x256xf32, #tpu.memory_space<vmem>>, vector<1x256xf32>
    %19 = vector.broadcast %18 : vector<1x256xf32> to vector<8x256xf32>
    %20 = arith.mulf %17, %19 : vector<8x256xf32>
    %c0_16 = arith.constant 0 : index
    %c0_17 = arith.constant 0 : index
    %21 = vector.load %arg12[%c0_16, %c0_17] : memref<72x256xf32, #tpu.memory_space<vmem>>, vector<8x256xf32>
    tpu.vector_store %arg12[%c0_16, %c0_17], %20 {strides = array<i32>} : memref<72x256xf32, #tpu.memory_space<vmem>>, vector<8x256xf32>,
    %c0_18 = arith.constant 0 : index
    %c1 = arith.constant 1 : index
    %22 = vector.load %arg11[%c0_18, %c1] : memref<8x290xf32, #tpu.memory_space<vmem>>, vector<8x256xf32>
    %c8 = arith.constant 8 : index
    %c0_19 = arith.constant 0 : index
    %23 = vector.load %arg12[%c8, %c0_19] : memref<72x256xf32, #tpu.memory_space<vmem>>, vector<8x256xf32>
    tpu.vector_store %arg12[%c8, %c0_19], %22 {strides = array<i32>} : memref<72x256xf32, #tpu.memory_space<vmem>>, vector<8x256xf32>,
    %c0_20 = arith.constant 0 : index
    %c2 = arith.constant 2 : index
    %24 = vector.load %arg11[%c0_20, %c2] : memref<8x290xf32, #tpu.memory_space<vmem>>, vector<8x256xf32>
    %c1_21 = arith.constant 1 : index
    %c0_22 = arith.constant 0 : index
    %25 = vector.load %arg6[%c1_21, %c0_22] : memref<2x256xf32, #tpu.memory_space<vmem>>, vector<1x256xf32>
    %26 = vector.broadcast %25 : vector<1x256xf32> to vector<8x256xf32>
    %27 = arith.mulf %24, %26 : vector<8x256xf32>
    %c16 = arith.constant 16 : index
    %c0_23 = arith.constant 0 : index
    %28 = vector.load %arg12[%c16, %c0_23] : memref<72x256xf32, #tpu.memory_space<vmem>>, vector<8x256xf32>
    tpu.vector_store %arg12[%c16, %c0_23], %27 {strides = array<i32>} : memref<72x256xf32, #tpu.memory_space<vmem>>, vector<8x256xf32>,
    %c0_24 = arith.constant 0 : index
    %c16_25 = arith.constant 16 : index
    %29 = vector.load %arg11[%c0_24, %c16_25] : memref<8x290xf32, #tpu.memory_space<vmem>>, vector<8x256xf32>
    %c0_26 = arith.constant 0 : index
    %c0_27 = arith.constant 0 : index
    %30 = vector.load %arg6[%c0_26, %c0_27] : memref<2x256xf32, #tpu.memory_space<vmem>>, vector<1x256xf32>
    %31 = vector.broadcast %30 : vector<1x256xf32> to vector<8x256xf32>
    %32 = arith.mulf %29, %31 : vector<8x256xf32>
    %c24 = arith.constant 24 : index
    %c0_28 = arith.constant 0 : index
    %33 = vector.load %arg12[%c24, %c0_28] : memref<72x256xf32, #tpu.memory_space<vmem>>, vector<8x256xf32>
    tpu.vector_store %arg12[%c24, %c0_28], %32 {strides = array<i32>} : memref<72x256xf32, #tpu.memory_space<vmem>>, vector<8x256xf32>,
    %c0_29 = arith.constant 0 : index
    %c17_30 = arith.constant 17 : index
    %34 = vector.load %arg11[%c0_29, %c17_30] : memref<8x290xf32, #tpu.memory_space<vmem>>, vector<8x256xf32>
    %c32 = arith.constant 32 : index
    %c0_31 = arith.constant 0 : index
    %35 = vector.load %arg12[%c32, %c0_31] : memref<72x256xf32, #tpu.memory_space<vmem>>, vector<8x256xf32>
    tpu.vector_store %arg12[%c32, %c0_31], %34 {strides = array<i32>} : memref<72x256xf32, #tpu.memory_space<vmem>>, vector<8x256xf32>,
    %c0_32 = arith.constant 0 : index
    %c18 = arith.constant 18 : index
    %36 = vector.load %arg11[%c0_32, %c18] : memref<8x290xf32, #tpu.memory_space<vmem>>, vector<8x256xf32>
    %c1_33 = arith.constant 1 : index
    %c0_34 = arith.constant 0 : index
    %37 = vector.load %arg6[%c1_33, %c0_34] : memref<2x256xf32, #tpu.memory_space<vmem>>, vector<1x256xf32>
    %38 = vector.broadcast %37 : vector<1x256xf32> to vector<8x256xf32>
    %39 = arith.mulf %36, %38 : vector<8x256xf32>
    %c40 = arith.constant 40 : index
    %c0_35 = arith.constant 0 : index
    %40 = vector.load %arg12[%c40, %c0_35] : memref<72x256xf32, #tpu.memory_space<vmem>>, vector<8x256xf32>
    tpu.vector_store %arg12[%c40, %c0_35], %39 {strides = array<i32>} : memref<72x256xf32, #tpu.memory_space<vmem>>, vector<8x256xf32>,
    %c0_36 = arith.constant 0 : index
    %c32_37 = arith.constant 32 : index
    %41 = vector.load %arg11[%c0_36, %c32_37] : memref<8x290xf32, #tpu.memory_space<vmem>>, vector<8x256xf32>
    %c0_38 = arith.constant 0 : index
    %c0_39 = arith.constant 0 : index
    %42 = vector.load %arg6[%c0_38, %c0_39] : memref<2x256xf32, #tpu.memory_space<vmem>>, vector<1x256xf32>
    %43 = vector.broadcast %42 : vector<1x256xf32> to vector<8x256xf32>
    %44 = arith.mulf %41, %43 : vector<8x256xf32>
    %c48 = arith.constant 48 : index
    %c0_40 = arith.constant 0 : index
    %45 = vector.load %arg12[%c48, %c0_40] : memref<72x256xf32, #tpu.memory_space<vmem>>, vector<8x256xf32>
    tpu.vector_store %arg12[%c48, %c0_40], %44 {strides = array<i32>} : memref<72x256xf32, #tpu.memory_space<vmem>>, vector<8x256xf32>,
    %c0_41 = arith.constant 0 : index
    %c33 = arith.constant 33 : index
    %46 = vector.load %arg11[%c0_41, %c33] : memref<8x290xf32, #tpu.memory_space<vmem>>, vector<8x256xf32>
    %c56 = arith.constant 56 : index
    %c0_42 = arith.constant 0 : index
    %47 = vector.load %arg12[%c56, %c0_42] : memref<72x256xf32, #tpu.memory_space<vmem>>, vector<8x256xf32>
    tpu.vector_store %arg12[%c56, %c0_42], %46 {strides = array<i32>} : memref<72x256xf32, #tpu.memory_space<vmem>>, vector<8x256xf32>,
    %c0_43 = arith.constant 0 : index
    %c34 = arith.constant 34 : index
    %48 = vector.load %arg11[%c0_43, %c34] : memref<8x290xf32, #tpu.memory_space<vmem>>, vector<8x256xf32>
    %c1_44 = arith.constant 1 : index
    %c0_45 = arith.constant 0 : index
    %49 = vector.load %arg6[%c1_44, %c0_45] : memref<2x256xf32, #tpu.memory_space<vmem>>, vector<1x256xf32>
    %50 = vector.broadcast %49 : vector<1x256xf32> to vector<8x256xf32>
    %51 = arith.mulf %48, %50 : vector<8x256xf32>
    %c64 = arith.constant 64 : index
    %c0_46 = arith.constant 0 : index
    %52 = vector.load %arg12[%c64, %c0_46] : memref<72x256xf32, #tpu.memory_space<vmem>>, vector<8x256xf32>
    tpu.vector_store %arg12[%c64, %c0_46], %51 {strides = array<i32>} : memref<72x256xf32, #tpu.memory_space<vmem>>, vector<8x256xf32>,
    %c0_47 = arith.constant 0 : index
    %c0_48 = arith.constant 0 : index
    %53 = vector.load %arg7[%c0_47, %c0_48] : memref<8x72xf32, #tpu.memory_space<vmem>>, vector<8x72xf32>
    %c0_49 = arith.constant 0 : index
    %c0_50 = arith.constant 0 : index
    %54 = vector.load %arg12[%c0_49, %c0_50] : memref<72x256xf32, #tpu.memory_space<vmem>>, vector<72x256xf32>
    %cst_51 = arith.constant dense<0.000000e+00> : vector<8x256xf32>
    %55 = tpu.matmul %53, %54, %cst_51 {dimension_numbers = #tpu.dot_dimension_numbers<[1], [0], [0], [1], [0, 0, 1, 1], [], []>} : vector<8x72xf32>, vector<72x256xf32>, vector<8x256xf32> -> vector<8x256xf32>
    %c0_52 = arith.constant 0 : index
    %c0_53 = arith.constant 0 : index
    %56 = vector.load %arg8[%c0_52, %c0_53] : memref<8x8xf32, #tpu.memory_space<vmem>>, vector<8x8xf32>
    %c0_54 = arith.constant 0 : index
    %c0_55 = arith.constant 0 : index
    %c0_56 = arith.constant 0 : index
    %57 = vector.load %arg5[%c0_54, %c0_55, %c0_56] : memref<1x8x256xf32, #tpu.memory_space<vmem>>, vector<1x8x256xf32>
    %58 = vector.shape_cast %57 : vector<1x8x256xf32> to vector<8x256xf32>
    %cst_57 = arith.constant dense<0.000000e+00> : vector<8x256xf32>
    %59 = tpu.matmul %56, %58, %cst_57 {dimension_numbers = #tpu.dot_dimension_numbers<[1], [0], [0], [1], [0, 0, 1, 1], [], []>} : vector<8x8xf32>, vector<8x256xf32>, vector<8x256xf32> -> vector<8x256xf32>
    %60 = arith.addf %55, %59 : vector<8x256xf32>
    %c0_58 = arith.constant 0 : index
    %c0_59 = arith.constant 0 : index
    %61 = vector.load %arg9[%c0_58, %c0_59] : memref<8x1xf32, #tpu.memory_space<vmem>>, vector<8x1xf32>
    %62 = vector.broadcast %61 : vector<8x1xf32> to vector<8x256xf32>
    %63 = arith.addf %60, %62 : vector<8x256xf32>
    %c0_60 = arith.constant 0 : index
    %c0_61 = arith.constant 0 : index
    %c0_62 = arith.constant 0 : index
    %64 = vector.load %arg10[%c0_60, %c0_61, %c0_62] : memref<1x8x256xf32, #tpu.memory_space<vmem>>, vector<1x8x256xf32>
    %65 = vector.shape_cast %64 : vector<1x8x256xf32> to vector<8x256xf32>
    %66 = vector.shape_cast %63 : vector<8x256xf32> to vector<1x8x256xf32>
    tpu.vector_store %arg10[%c0_60, %c0_61, %c0_62], %66 {strides = array<i32>} : memref<1x8x256xf32, #tpu.memory_space<vmem>>, vector<1x8x256xf32>,
    return
  }
  func.func @transform_0(%arg0: i32) -> (i32, i32) {
    %c0_i32 = arith.constant 0 : i32
    %c0_i32_0 = arith.constant 0 : i32
    %c0_i32_1 = arith.constant 0 : i32
    return %c0_i32, %c0_i32_0 : i32, i32
  }
  func.func @transform_1(%arg0: i32) -> (i32, i32) {
    %c0_i32 = arith.constant 0 : i32
    %c0_i32_0 = arith.constant 0 : i32
    %c0_i32_1 = arith.constant 0 : i32
    return %c0_i32, %c0_i32_0 : i32, i32
  }
  func.func @transform_2(%arg0: i32) -> (i32, i32) {
    %c0_i32 = arith.constant 0 : i32
    %c0_i32_0 = arith.constant 0 : i32
    %c0_i32_1 = arith.constant 0 : i32
    return %c0_i32, %c0_i32_0 : i32, i32
  }
  func.func @transform_3(%arg0: i32) -> (i32, i32, i32) {
    %c0_i32 = arith.constant 0 : i32
    %c0_i32_0 = arith.constant 0 : i32
    %c0_i32_1 = arith.constant 0 : i32
    return %arg0, %c0_i32, %c0_i32_0 : i32, i32, i32
  }
  func.func @transform_4(%arg0: i32) -> (i32, i32, i32) {
    %c0_i32 = arith.constant 0 : i32
    %c0_i32_0 = arith.constant 0 : i32
    %c0_i32_1 = arith.constant 0 : i32
    return %arg0, %c0_i32, %c0_i32_0 : i32, i32, i32
  }
  func.func @transform_5(%arg0: i32) -> (i32, i32) {
    %c0_i32 = arith.constant 0 : i32
    %c0_i32_0 = arith.constant 0 : i32
    %c0_i32_1 = arith.constant 0 : i32
    return %c0_i32, %c0_i32_0 : i32, i32
  }
  func.func @transform_6(%arg0: i32) -> (i32, i32) {
    %c0_i32 = arith.constant 0 : i32
    %c0_i32_0 = arith.constant 0 : i32
    %c0_i32_1 = arith.constant 0 : i32
    return %c0_i32, %c0_i32_0 : i32, i32
  }
  func.func @transform_7(%arg0: i32) -> (i32, i32) {
    %c0_i32 = arith.constant 0 : i32
    %c0_i32_0 = arith.constant 0 : i32
    %c0_i32_1 = arith.constant 0 : i32
    return %c0_i32, %c0_i32_0 : i32, i32
  }
  func.func @transform_8(%arg0: i32) -> (i32, i32) {
    %c0_i32 = arith.constant 0 : i32
    %c0_i32_0 = arith.constant 0 : i32
    %c0_i32_1 = arith.constant 0 : i32
    return %c0_i32, %c0_i32_0 : i32, i32
  }
  func.func @transform_9(%arg0: i32) -> (i32, i32, i32) {
    %c0_i32 = arith.constant 0 : i32
    %c0_i32_0 = arith.constant 0 : i32
    %c0_i32_1 = arith.constant 0 : i32
    return %arg0, %c0_i32, %c0_i32_0 : i32, i32, i32
  }
}

</mosaic_0001>

<bundles_post_ra>
// kernel: gen_block_forward.2
= control target key start
LH: loop header
LB: loop body
LE: loop exit
PB: predicated region body
PF: predicated region fallthrough
CT: control target
= control target key end

     0   :  { %s958_s29 = smov 0   ;;  %s1076_s0 = inlined_call_operand.<no memory space> [shape: f32[1,1], index: 0, kind: input, shape index: {}]   ;;  %s1077_s1 = inlined_call_operand.vmem [shape: f32[8,1], index: 1, kind: input, shape index: {}]   ;;  %s1078_s2 = inlined_call_operand.vmem [shape: f32[8,1], index: 2, kind: input, shape index: {}]   ;;  %s1079_s3 = inlined_call_operand.vmem [shape: f32[2,8,256], index: 3, kind: input, shape index: {}]   ;;  %s1080_s4 = inlined_call_operand.vmem [shape: f32[2,256], index: 4, kind: input, shape index: {}]   ;;  %s1081_s5 = inlined_call_operand.vmem [shape: f32[8,72], index: 5, kind: input, shape index: {}]   ;;  %s1082_s6 = inlined_call_operand.vmem [shape: f32[8,1], index: 6, kind: input, shape index: {}]   ;;  %s1083_s7 = inlined_call_operand.vmem [shape: f32[2,8,256], index: 7, kind: output, shape index: {0}]   ;;  %s1084_s8 = inlined_call_operand.vmem [shape: f32[2,8,2], index: 8, kind: output, shape index: {1}]  }
   0x1   :  { %14 = sst [smem:[#allocation4]] %s1076_s0 }
   0x2 LB: > { %s843_s30 = sadd.s32 4294967295, %s892_s29   ;;  %p847_p0 = scmp.ge.s32.totalorder %s892_s29, 1  ;;  %s892_s29 = sphi %s958_s29, %s20_s29  }
   0x3   : > { %p266_p1 = scmp.lt.s32.totalorder %s892_s29, 3 }
   0x5   : > { %p267_p2 = pnand %p847_p0, %p266_p1 }
   0x6   : > { %s895_s16 = smov (!%p267_p2), 34   ;;  %s896_s19 = smov (!%p267_p2), 32  }
   0x7   : > { %270 = sbr.rel (%p267_p2) target bundleno = 778 (0x30a), region = 48  ;;  %s897_s22 = smov (!%p267_p2), 18  }
   0x8   : > { %s898_s25 = smov (!%p267_p2), 16   ;;  %s899_s26 = smov (!%p267_p2), 2  }
   0x9   : > { %p304_p3 = scmp.lt.s32.totalorder (!%p267_p2), %s843_s30, 1  ;;  %s318_s28 = sld [smem:[#allocation4]] (!%p267_p2) }
   0xa   : > { %s901_s11 = smov (!%p267_p2), 17   ;;  %s902_s12 = smov (!%p267_p2), 95  }
   0xb   : > { %s903_s13 = smov (!%p267_p2), 111   ;;  %s904_s14 = smov (!%p267_p2), 94  }
   0xc   : > { %v321_v0 = vld [vmem:[%s1077_s1] sm:$0xff]  ;;  %v367_v1 = vlaneseq  ;;  %v894_v2 = vmov 0   ;;  %v900_v16 = vmov 0.0   ;;  %s1086_s30 = smov (!%p304_p3, %s843_s30), 1  ;;  %vm346_vm0 = vcmask 277504   ;;  %s905_s15 = smov 96  }
   0xd   : > { %885 = vset.pattern.permute.xlu0 %v894_v2  ;;  %v329_v4 = vld [vmem:[%s1078_s2] sm:$0xff]  ;;  %344 = vst [vmem:[#allocation2] sm:$0xff] %v900_v16  ;;  %736 = vmatprep.mubr.f32.mxu0 %v900_v16  ;;  %s859_s27 = sshll.u32 %s1086_s30, 4  ;;  %347 = vst.msk [vmem:[#allocation2 + $0x10] sm:$0xff] %vm346_vm0, %v900_v16  ;;  %vm359_vm3 = vcmask 1047688   ;;  %vm354_vm4 = vcmask 138240  }
   0xe   : > { %324 = vperm.xlu0 %885, %v321_v0   ;;  %v368_v3 = vshrl.u32 %v367_v1, 7  ;;  %v855_v5 = vld [vmem:[%s1080_s4 + $0x1] ss:$2 sm:$0x3]  ;;  %s308_s0 = scalar_lea.vmem %s1079_s3, %s859_s27  ;;  %vm519_vm5 = vcmask 146432   ;;  %s907_s17 = smov 112  }
   0xf   : > { %v546_v8 = vld [vmem:[%s1080_s4] ss:$2 sm:$0x3]  ;;  %v854_v10 = vld [vmem:[%s1080_s4 + $0x1] ss:$2 sm:$0x3]  ;;  %v339_v23 = vstv %s318_s28  ;;  %s313_s9 = scalar_lea.vmem %s1083_s7, %s859_s27 }
  0x10   : > { %v975_v6 = vsub.s32 0, %v368_v3  ;;  %v445_v12 = vld [vmem:[%s1080_s4] ss:$2 sm:$0x3]  ;;  %v320_v19 = vld [vmem:[%s308_s0 + $0x8] sm:$0xff]  ;;  %v1012_v29 = vsub.s32 1, %v368_v3 }
  0x11   : > { %v853_v14 = vld [vmem:[%s1080_s4 + $0x1] ss:$2 sm:$0x3]  ;;  %vm560_vm6 = vcmask 261120   ;;  %vm459_vm7 = vcmask 130048   ;;  %s908_s18 = smov 126  }
  0x12   : > { %332 = vperm.xlu0 %885, %v329_v4   ;;  %v611_v7 = vrot.slane %v855_v5, %v975_v6  ;;  %v551_v9 = vrot.slane %v546_v8, %v975_v6  ;;  %v510_v11 = vrot.slane %v854_v10, %v975_v6  ;;  %v450_v13 = vrot.slane %v445_v12, %v975_v6  ;;  %v319_v18 = vld [vmem:[%s308_s0] sm:$0xff]  ;;  %s852_s10 = sshll.u32 %s1086_s30, 3 }
  0x13   : > { %v409_v15 = vrot.slane %v853_v14, %v975_v6  ;;  %v615_v31 = vrot.slane %v855_v5, %v1012_v29  ;;  %v555_v32 = vrot.slane %v546_v8, %v1012_v29  ;;  %v514_v33 = vrot.slane %v854_v10, %v1012_v29  ;;  %v662_v8 = vld [vmem:[%s1082_s6] sm:$0xff] }
  0x14   : > { %v454_v34 = vrot.slane %v445_v12, %v1012_v29  ;;  %v413_v35 = vrot.slane %v853_v14, %v1012_v29  ;;  %vm418_vm8 = vcmask 15360   ;;  %vm636_vm9 = vcmask 769024  }
  0x15   : > { %vm596_vm10 = vcmask 777216   ;;  %vm577_vm11 = vcmask 785408   ;;  %vm536_vm12 = vcmask 900096   ;;  %vm495_vm13 = vcmask 908288  }
  0x16   : > { %616 = vrot.lane.b32.xlu0 %v611_v7, %s895_s16  ;;  %vm476_vm14 = vcmask 916480   ;;  %vm435_vm15 = vcmask 1031168  }
  0x1a   : > { %556 = vrot.lane.b32.xlu0 %v551_v9, %s896_s19 }
  0x1e   : > { %515 = vrot.lane.b32.xlu0 %v510_v11, %s897_s22 }
  0x22   : > { %455 = vrot.lane.b32.xlu0 %v450_v13, %s898_s25 }
  0x26   : > { %414 = vrot.lane.b32.xlu0 %v409_v15, %s899_s26 }
  0x89   : > { %v325_v17 = vpop.permute.xlu0 %324 }
  0x8a   : > { %v327_v20 = vsub.f32 %v319_v18, %v325_v17  ;;  %v328_v21 = vsub.f32 %v320_v19, %v325_v17 }
  0x8d   : > { %v333_v22 = vpop.permute.xlu0 %332 }
  0x8e   : > { %v335_v24 = vmul.f32 %v333_v22, %v327_v20  ;;  %v336_v25 = vmul.f32 %v333_v22, %v328_v21 }
  0x90   : > { %vm337_vm1 = vcmp.ge.f32.partialorder %v335_v24, 0.0  ;;  %v340_v26 = vmul.f32 %v339_v23, %v335_v24  ;;  %v341_v28 = vmul.f32 %v339_v23, %v336_v25  ;;  %vm338_vm2 = vcmp.ge.f32.partialorder %v336_v25, 0.0 }
  0x91   : > { %v617_v41 = vpop.permute.xlu0 %616 }
  0x92   : > { %v342_v27 = vsel %vm337_vm1, %v335_v24, %v340_v26  ;;  %v343_v30 = vsel %vm338_vm2, %v336_v25, %v341_v28  ;;  %vm668_vm1 = vcmask 588800   ;;  %vm748_vm2 = vcmask 7168  }
  0x93   : > { %350 = vrot.lane.b32.xlu1 %v342_v27, %s901_s11 }
  0x95   : > { %v557_v44 = vpop.permute.xlu0 %556 }
  0x97   : > { %352 = vrot.lane.b32.xlu1 %v343_v30, %s901_s11 }
  0x99   : > { %v516_v49 = vpop.permute.xlu0 %515 }
  0x9b   : > { %618 = vrot.lane.b32.xlu1 %v615_v31, %s895_s16  ;;  %s906_s16 = smov 110  }
  0x9d   : > { %v456_v53 = vpop.permute.xlu0 %455 }
  0x9f   : > { %558 = vrot.lane.b32.xlu1 %v555_v32, %s896_s19  ;;  %s909_s19 = smov 127  }
  0xa1   : > { %v415_v3 = vpop.permute.xlu0 %414 }
  0xa3   : > { %517 = vrot.lane.b32.xlu1 %v514_v33, %s897_s22 }
  0xa7   : > { %457 = vrot.lane.b32.xlu1 %v454_v34, %s898_s25 }
  0xab   : > { %416 = vrot.lane.b32.xlu1 %v413_v35, %s899_s26 }
 0x105   : > { %v351_v36 = vpop.permute.xlu1 %350 }
 0x106   : > { %360 = vst.msk [vmem:[#allocation2] sm:$0xff] %vm359_vm3, %v351_v36  ;;  %vm755_vm3 = vcmask 15368  }
 0x109   : > { %v353_v37 = vpop.permute.xlu1 %352 }
 0x10a   : > { %v1024_v38 = vsel %vm354_vm4, %v351_v36, %v353_v37  ;;  %362 = vst.msk [vmem:[#allocation2 + $0x10] sm:$0xff] %vm354_vm4, %v353_v37 }
 0x10d   : > { %v1026_v39 = vld [vmem:[#allocation2] sm:$0xff]  ;;  %v619_v40 = vpop.permute.xlu1 %618 }
 0x10e   : > { %590 = vrot.lane.b32.xlu1 %v1026_v39, %s902_s12  ;;  %v624_v48 = vmul.f32 %v617_v41, %v1026_v39  ;;  %v565_v51 = vmul.f32 %v557_v44, %v1026_v39  ;;  %v524_v52 = vmul.f32 %v516_v49, %v1026_v39  ;;  %v464_v54 = vmul.f32 %v456_v53, %v1026_v39 }
 0x10f   : > { %v620_v59 = vsel %vm346_vm0, %v617_v41, %v619_v40  ;;  %v423_v4 = vmul.f32 %v1026_v39, %v415_v3  ;;  %vm393_vm0 = vcmask 1039360  }
 0x110   : > { %v625_v61 = vmul.f32 %v620_v59, %v1024_v38 }
 0x111   : > { %v605_v42 = vld [vmem:[#allocation2 + $0x10] sm:$0xff]  ;;  %v559_v43 = vpop.permute.xlu1 %558 }
 0x112   : > { %594 = vrot.lane.b32.xlu0 %v605_v42, %s902_s12  ;;  %493 = vrot.lane.b32.xlu1 %v605_v42, %s903_s13  ;;  %v626_v45 = vmul.f32 %v619_v40, %v605_v42  ;;  %v567_v47 = vmul.f32 %v605_v42, %v559_v43  ;;  %v561_v63 = vsel %vm560_vm6, %v557_v44, %v559_v43  ;;  %v365_v44 = vld [vmem:[%s1080_s4] ss:$2 sm:$0x3] }
 0x113   : > { %v566_v1 = vmul.f32 %v561_v63, %v1024_v38 }
 0x115   : > { %v518_v46 = vpop.permute.xlu1 %517 }
 0x116   : > { %489 = vrot.lane.b32.xlu0 %v1026_v39, %s903_s13  ;;  %592 = vrot.lane.b32.xlu1 %v1024_v38, %s902_s12  ;;  %v526_v55 = vmul.f32 %v605_v42, %v518_v46  ;;  %v520_v60 = vsel %vm519_vm5, %v516_v49, %v518_v46  ;;  %v374_v49 = vrot.slane %v365_v44, %v1012_v29  ;;  %s317_s12 = scalar_lea.vmem %s1084_s8, %s852_s10 }
 0x117   : > { %v525_v62 = vmul.f32 %v520_v60, %v1024_v38 }
 0x119   : > { %v458_v50 = vpop.permute.xlu1 %457 }
 0x11a   : > { %491 = vrot.lane.b32.xlu0 %v1024_v38, %s903_s13  ;;  %634 = vrot.lane.b32.xlu1 %v626_v45, %s904_s14  ;;  %v466_v57 = vmul.f32 %v605_v42, %v458_v50  ;;  %v460_v0 = vsel %vm459_vm7, %v456_v53, %v458_v50 }
 0x11b   : > { %v465_v2 = vmul.f32 %v460_v0, %v1024_v38 }
 0x11d   : > { %v417_v56 = vpop.permute.xlu1 %416 }
 0x11e   : > { %630 = vrot.lane.b32.xlu0 %v624_v48, %s904_s14  ;;  %575 = vrot.lane.b32.xlu1 %v567_v47, %s905_s15  ;;  %v425_v58 = vmul.f32 %v605_v42, %v417_v56  ;;  %v419_v5 = vsel %vm418_vm8, %v415_v3, %v417_v56 }
 0x11f   : > { %v424_v7 = vmul.f32 %v419_v5, %v1024_v38 }
 0x122   : > { %571 = vrot.lane.b32.xlu0 %v565_v51, %s905_s15  ;;  %530 = vrot.lane.b32.xlu1 %v524_v52, %s906_s16  ;;  %v370_v51 = vrot.slane %v365_v44, %v975_v6 }
 0x124   : > { %v377_v56 = vmul.f32 %v1026_v39, %v370_v51 }
 0x126   : > { %470 = vrot.lane.b32.xlu1 %v464_v54, %s907_s17  ;;  %534 = vrot.lane.b32.xlu0 %v526_v55, %s906_s16  ;;  %v378_v55 = vmul.f32 %v374_v49, %v1024_v38 }
 0x12a   : > { %474 = vrot.lane.b32.xlu0 %v466_v57, %s907_s17  ;;  %433 = vrot.lane.b32.xlu1 %v425_v58, %s908_s18  ;;  %v643_v57 = vld [vmem:[%s1081_s5] sm:$0xff] }
 0x12e   : > { %632 = vrot.lane.b32.xlu0 %v625_v61, %s904_s14  ;;  %532 = vrot.lane.b32.xlu1 %v525_v62, %s906_s16 }
 0x132   : > { %573 = vrot.lane.b32.xlu0 %v566_v1, %s905_s15  ;;  %472 = vrot.lane.b32.xlu1 %v465_v2, %s907_s17 }
 0x136   : > { %429 = vrot.lane.b32.xlu0 %v423_v4, %s908_s18  ;;  %389 = vrot.lane.b32.xlu1 %v1024_v38, %s909_s19 }
 0x13a   : > { %387 = vrot.lane.b32.xlu1 %v1026_v39, %s909_s19  ;;  %431 = vrot.lane.b32.xlu0 %v424_v7, %s908_s18 }
 0x13e   : > { %391 = vrot.lane.b32.xlu0 %v605_v42, %s909_s19 }
 0x142   : > { %665 = vperm.xlu0 %885, %v662_v8  }
 0x180   : > { %v591_v9 = vpop.permute.xlu1 %590 }
 0x184   : > { %v595_v10 = vpop.permute.xlu0 %594  ;;  %v494_v11 = vpop.permute.xlu1 %493 }
 0x188   : > { %v490_v12 = vpop.permute.xlu0 %489  ;;  %v593_v13 = vpop.permute.xlu1 %592 }
 0x189   : > { %v598_v28 = vsel %vm596_vm10, %v593_v13, %v595_v10  ;;  %v597_v32 = vsel %vm596_vm10, %v591_v9, %v593_v13 }
 0x18c   : > { %v492_v14 = vpop.permute.xlu0 %491  ;;  %v635_v15 = vpop.permute.xlu1 %634 }
 0x18d   : > { %v497_v41 = vsel %vm495_vm13, %v492_v14, %v494_v11  ;;  %v496_v42 = vsel %vm495_vm13, %v490_v12, %v492_v14 }
 0x190   : > { %v631_v16 = vpop.permute.xlu0 %630  ;;  %v576_v17 = vpop.permute.xlu1 %575 }
 0x194   : > { %v572_v18 = vpop.permute.xlu0 %571  ;;  %v531_v19 = vpop.permute.xlu1 %530 }
 0x198   : > { %v535_v20 = vpop.permute.xlu0 %534  ;;  %v471_v21 = vpop.permute.xlu1 %470 }
 0x19c   : > { %v475_v22 = vpop.permute.xlu0 %474  ;;  %v434_v23 = vpop.permute.xlu1 %433 }
 0x1a0   : > { %v633_v24 = vpop.permute.xlu0 %632  ;;  %v533_v25 = vpop.permute.xlu1 %532 }
 0x1a1   : > { %v638_v26 = vsel %vm636_vm9, %v633_v24, %v635_v15  ;;  %v637_v27 = vsel %vm636_vm9, %v631_v16, %v633_v24  ;;  %v538_v35 = vsel %vm536_vm12, %v533_v25, %v535_v20  ;;  %v537_v37 = vsel %vm536_vm12, %v531_v19, %v533_v25 }
 0x1a2   : > { %686 = vmatprep.subr.mxu0 %v638_v26 }
 0x1a3   : > { %687 = vmatpush1.msra.mxu0 %v637_v27 }
 0x1a4   : > { %v574_v30 = vpop.permute.xlu0 %573  ;;  %688 = vmatprep.subr.mxu0 %v598_v28  ;;  %v473_v31 = vpop.permute.xlu1 %472 }
 0x1a5   : > { %689 = vmatpush1.msra.mxu0 %v597_v32  ;;  %v579_v33 = vsel %vm577_vm11, %v574_v30, %v576_v17  ;;  %v578_v34 = vsel %vm577_vm11, %v572_v18, %v574_v30  ;;  %v478_v43 = vsel %vm476_vm14, %v473_v31, %v475_v22  ;;  %v477_v46 = vsel %vm476_vm14, %v471_v21, %v473_v31 }
 0x1a6   : > { %690 = vmatprep.subr.mxu0 %v579_v33 }
 0x1a7   : > { %691 = vmatpush1.msra.mxu0 %v578_v34 }
 0x1a8   : > { %v430_v36 = vpop.permute.xlu0 %429  ;;  %692 = vmatprep.subr.mxu0 %v538_v35  ;;  %v390_v40 = vpop.permute.xlu1 %389 }
 0x1a9   : > { %693 = vmatpush1.msra.mxu0 %v537_v37 }
 0x1aa   : > { %694 = vmatprep.subr.mxu0 %v497_v41 }
 0x1ab   : > { %695 = vmatpush1.msra.mxu0 %v496_v42 }
 0x1ac   : > { %v432_v45 = vpop.permute.xlu0 %431  ;;  %696 = vmatprep.subr.mxu0 %v478_v43  ;;  %v388_v50 = vpop.permute.xlu1 %387 }
 0x1ad   : > { %697 = vmatpush1.msra.mxu0 %v477_v46  ;;  %v437_v47 = vsel %vm435_vm15, %v432_v45, %v434_v23  ;;  %v436_v48 = vsel %vm435_vm15, %v430_v36, %v432_v45  ;;  %v394_v54 = vsel %vm393_vm0, %v388_v50, %v390_v40 }
 0x1ae   : > { %698 = vmatprep.subr.mxu0 %v437_v47 }
 0x1af   : > { %699 = vmatpush1.msra.mxu0 %v436_v48 }
 0x1b0   : > { %v392_v52 = vpop.permute.xlu0 %391 }
 0x1b1   : > { %v395_v53 = vsel %vm393_vm0, %v390_v40, %v392_v52 }
 0x1b2   : > { %700 = vmatprep.subr.mxu0 %v395_v53 }
 0x1b3   : > { %701 = vmatpush1.msra.mxu0 %v394_v54 }
 0x1b4   : > { %702 = vmatprep.subr.mxu0 %v378_v55 }
 0x1b5   : > { %703 = vmatpush1.msra.mxu0 %v377_v56 }
 0x1b6   : > { %856 = vmatmul.mubr.msk.f32.vlgmr.msra.gmra.mxu0 %vm668_vm1, %v643_v57 }
 0x1bd   : > { %v666_v6 = vpop.permute.xlu0 %665 }
 0x276   : > { %v738_v29 = vpop.f32.mrf.mxu0 }
 0x277   : > { %v739_v38 = vadd.f32 %v738_v29, %v666_v6 }
 0x278   : > { %v740_v58 = vpop.f32.mrf.mxu0 }
 0x279   : > { %743 = vst [vmem:[%s313_s9] sm:$0xff] %v739_v38  ;;  %v741_v39 = vadd.f32 %v740_v58, %v666_v6  ;;  %v750_v60 = vmul.f32 %v739_v38, %v739_v38 }
 0x27b   : > { %744 = vst [vmem:[%s313_s9 + $0x8] sm:$0xff] %v741_v39  ;;  %v745_v59 = vadd.f32 %v741_v39, %v739_v38  ;;  %v751_v61 = vmul.f32 %v741_v39, %v741_v39 }
 0x27d   : > { %746 = vadd.xlane.f32.xlu1 %v745_v59  ;;  %v752_v62 = vadd.f32 %v751_v61, %v750_v60 }
 0x27f   : > { %753 = vadd.xlane.f32.xlu0 %v752_v62 }
 0x306   : > { %v747_v63 = vpop.xlane.xlu1 %746 }
 0x307   : > { %749 = vst.msk [vmem:[%s317_s12] sm:$0xff] %vm748_vm2, %v747_v63 }
 0x308   : > { %v754_v0 = vpop.xlane.xlu0 %753 }
 0x309   : > { %756 = vst.msk [vmem:[%s317_s12] sm:$0xff] %vm755_vm3, %v754_v0 }
 0x30a PF: > { %s20_s29 = sadd.s32 1, %s892_s29  }
 0x30b   : > { %p17_p4 = scmp.ge.s32.totalorder %s20_s29, 4  }
 0x30d   :  { %19 = sbr.rel (!%p17_p4) target bundleno = 2 (0x2), region = 91 }

// kernel: gen_block_forward.3
= control target key start
LH: loop header
LB: loop body
LE: loop exit
PB: predicated region body
PF: predicated region fallthrough
CT: control target
= control target key end

     0   :  { %s1051_s11 = smov 0   ;;  %s1179_s0 = inlined_call_operand.<no memory space> [shape: f32[1,1], index: 0, kind: input, shape index: {}]   ;;  %s1180_s1 = inlined_call_operand.vmem [shape: f32[8,1], index: 1, kind: input, shape index: {}]   ;;  %s1181_s2 = inlined_call_operand.vmem [shape: f32[8,1], index: 2, kind: input, shape index: {}]   ;;  %s1182_s3 = inlined_call_operand.vmem [shape: f32[2,8,256], index: 3, kind: input, shape index: {}]   ;;  %s1183_s4 = inlined_call_operand.vmem [shape: f32[2,8,256], index: 4, kind: input, shape index: {}]   ;;  %s1184_s5 = inlined_call_operand.vmem [shape: f32[2,256], index: 5, kind: input, shape index: {}]   ;;  %s1185_s6 = inlined_call_operand.vmem [shape: f32[8,72], index: 6, kind: input, shape index: {}]   ;;  %s1186_s7 = inlined_call_operand.vmem [shape: f32[8,8], index: 7, kind: input, shape index: {}]   ;;  %s1187_s8 = inlined_call_operand.vmem [shape: f32[8,1], index: 8, kind: input, shape index: {}]   ;;  %s1188_s9 = inlined_call_operand.vmem [shape: f32[2,8,256], index: 9, kind: output, shape index: {}]  }
   0x1   :  { %14 = sst [smem:[#allocation4]] %s1179_s0 }
   0x2 LB: > { %s928_s12 = sadd.s32 4294967295, %s980_s11   ;;  %p932_p0 = scmp.ge.s32.totalorder %s980_s11, 1  ;;  %s980_s11 = sphi %s1051_s11, %s20_s11  }
   0x3   : > { %p298_p1 = scmp.lt.s32.totalorder %s980_s11, 3 }
   0x5   : > { %p299_p2 = pnand %p932_p0, %p298_p1 }
   0x6   : > { %s983_s20 = smov (!%p299_p2), 34   ;;  %s984_s23 = smov (!%p299_p2), 32  }
   0x7   : > { %302 = sbr.rel (%p299_p2) target bundleno = 638 (0x27e), region = 56  ;;  %s985_s26 = smov (!%p299_p2), 18  }
   0x8   : > { %s986_s29 = smov (!%p299_p2), 16   ;;  %s987_s30 = smov (!%p299_p2), 2  }
   0x9   : > { %p339_p3 = scmp.lt.s32.totalorder (!%p299_p2), %s928_s12, 1  ;;  %s354_s13 = sld [smem:[#allocation4]] (!%p299_p2) }
   0xa   : > { %s990_s16 = smov (!%p299_p2), 95   ;;  %s991_s17 = smov (!%p299_p2), 111  }
   0xb   : > { %s992_s18 = smov (!%p299_p2), 94   ;;  %s993_s19 = smov (!%p299_p2), 96  }
   0xc   : > { %v357_v0 = vld [vmem:[%s1180_s1] sm:$0xff]  ;;  %v403_v1 = vlaneseq  ;;  %v982_v2 = vmov 0   ;;  %v988_v16 = vmov 0.0   ;;  %s1190_s12 = smov (!%p339_p3, %s928_s12), 1  ;;  %vm382_vm0 = vcmask 277504   ;;  %s995_s21 = smov 112  }
   0xd   : > { %973 = vset.pattern.permute.xlu0 %v982_v2  ;;  %v365_v4 = vld [vmem:[%s1181_s2] sm:$0xff]  ;;  %380 = vst [vmem:[#allocation2] sm:$0xff] %v988_v16  ;;  %769 = vmatprep.mubr.f32.mxu0 %v988_v16  ;;  %s1096_s10 = sshll.u32 %s1190_s12, 4  ;;  %383 = vst.msk [vmem:[#allocation2 + $0x10] sm:$0xff] %vm382_vm0, %v988_v16  ;;  %s989_s12 = smov 17   ;;  %vm395_vm3 = vcmask 1047688  }
   0xe   : > { %360 = vperm.xlu0 %973, %v357_v0   ;;  %v404_v3 = vshrl.u32 %v403_v1, 7  ;;  %v941_v5 = vld [vmem:[%s1184_s5 + $0x1] ss:$2 sm:$0x3]  ;;  %844 = vmatprep.mubr.f32.mxu1 %v988_v16  ;;  %s343_s15 = scalar_lea.vmem %s1182_s3, %s1096_s10  ;;  %vm390_vm4 = vcmask 138240   ;;  %vm555_vm5 = vcmask 146432   ;;  %s348_s25 = scalar_lea.vmem %s1183_s4, %s1096_s10 }
   0xf   : > { %v582_v8 = vld [vmem:[%s1184_s5] ss:$2 sm:$0x3]  ;;  %v940_v10 = vld [vmem:[%s1184_s5 + $0x1] ss:$2 sm:$0x3]  ;;  %v375_v23 = vstv %s354_s13 }
  0x10   : > { %v1068_v6 = vsub.s32 0, %v404_v3  ;;  %v481_v12 = vld [vmem:[%s1184_s5] ss:$2 sm:$0x3]  ;;  %v356_v19 = vld [vmem:[%s343_s15 + $0x8] sm:$0xff]  ;;  %v1103_v29 = vsub.s32 1, %v404_v3 }
  0x11   : > { %v939_v14 = vld [vmem:[%s1184_s5 + $0x1] ss:$2 sm:$0x3]  ;;  %vm596_vm6 = vcmask 261120   ;;  %vm495_vm7 = vcmask 130048   ;;  %s996_s22 = smov 126  }
  0x12   : > { %368 = vperm.xlu0 %973, %v365_v4   ;;  %v647_v7 = vrot.slane %v941_v5, %v1068_v6  ;;  %v587_v9 = vrot.slane %v582_v8, %v1068_v6  ;;  %v546_v11 = vrot.slane %v940_v10, %v1068_v6  ;;  %v486_v13 = vrot.slane %v481_v12, %v1068_v6  ;;  %v355_v18 = vld [vmem:[%s343_s15] sm:$0xff]  ;;  %v700_v4 = vld [vmem:[%s348_s25 + $0x8] sm:$0xff]  ;;  %s997_s28 = smov 127  }
  0x13   : > { %v445_v15 = vrot.slane %v939_v14, %v1068_v6  ;;  %v651_v31 = vrot.slane %v941_v5, %v1103_v29  ;;  %v591_v32 = vrot.slane %v582_v8, %v1103_v29  ;;  %v550_v33 = vrot.slane %v940_v10, %v1103_v29  ;;  %v699_v5 = vld [vmem:[%s348_s25] sm:$0xff]  ;;  %735 = vmatprep.subr.mxu0 %v700_v4 }
  0x14   : > { %v490_v34 = vrot.slane %v481_v12, %v1103_v29  ;;  %v449_v35 = vrot.slane %v939_v14, %v1103_v29  ;;  %vm454_vm8 = vcmask 15360   ;;  %vm701_vm9 = vcmask 64512   ;;  %736 = vmatpush1.msra.mxu0 %v699_v5 }
  0x15   : > { %vm672_vm10 = vcmask 769024   ;;  %vm632_vm11 = vcmask 777216   ;;  %vm613_vm12 = vcmask 785408   ;;  %vm572_vm13 = vcmask 900096  }
  0x16   : > { %652 = vrot.lane.b32.xlu0 %v647_v7, %s983_s20  ;;  %v698_v7 = vld [vmem:[%s1186_s7] sm:$0xff]  ;;  %vm531_vm14 = vcmask 908288   ;;  %vm512_vm15 = vcmask 916480  }
  0x17   : > { %942 = vmatmul.mubr.msk.f32.vlgmr.msra.gmra.mxu0 %vm701_vm9, %v698_v7 }
  0x1a   : > { %592 = vrot.lane.b32.xlu0 %v587_v9, %s984_s23 }
  0x1e   : > { %551 = vrot.lane.b32.xlu0 %v546_v11, %s985_s26  ;;  %v851_v11 = vld [vmem:[%s1187_s8] sm:$0xff] }
  0x22   : > { %491 = vrot.lane.b32.xlu0 %v486_v13, %s986_s29 }
  0x26   : > { %450 = vrot.lane.b32.xlu0 %v445_v15, %s987_s30 }
  0x89   : > { %v361_v17 = vpop.permute.xlu0 %360 }
  0x8a   : > { %v363_v20 = vsub.f32 %v355_v18, %v361_v17  ;;  %v364_v21 = vsub.f32 %v356_v19, %v361_v17 }
  0x8d   : > { %v369_v22 = vpop.permute.xlu0 %368 }
  0x8e   : > { %v371_v24 = vmul.f32 %v369_v22, %v363_v20  ;;  %v372_v25 = vmul.f32 %v369_v22, %v364_v21 }
  0x90   : > { %vm373_vm1 = vcmp.ge.f32.partialorder %v371_v24, 0.0  ;;  %v376_v26 = vmul.f32 %v375_v23, %v371_v24  ;;  %v377_v28 = vmul.f32 %v375_v23, %v372_v25  ;;  %vm374_vm2 = vcmp.ge.f32.partialorder %v372_v25, 0.0 }
  0x91   : > { %v653_v41 = vpop.permute.xlu0 %652 }
  0x92   : > { %v378_v27 = vsel %vm373_vm1, %v371_v24, %v376_v26  ;;  %v379_v30 = vsel %vm374_vm2, %v372_v25, %v377_v28  ;;  %vm429_vm1 = vcmask 1039360   ;;  %vm776_vm2 = vcmask 588800  }
  0x93   : > { %386 = vrot.lane.b32.xlu1 %v378_v27, %s989_s12 }
  0x95   : > { %v593_v44 = vpop.permute.xlu0 %592 }
  0x97   : > { %388 = vrot.lane.b32.xlu1 %v379_v30, %s989_s12 }
  0x99   : > { %v552_v49 = vpop.permute.xlu0 %551 }
  0x9b   : > { %654 = vrot.lane.b32.xlu1 %v651_v31, %s983_s20  ;;  %s994_s20 = smov 110  }
  0x9d   : > { %v492_v53 = vpop.permute.xlu0 %491 }
  0x9f   : > { %594 = vrot.lane.b32.xlu1 %v591_v32, %s984_s23 }
  0xa1   : > { %v451_v3 = vpop.permute.xlu0 %450 }
  0xa3   : > { %553 = vrot.lane.b32.xlu1 %v550_v33, %s985_s26 }
  0xa7   : > { %493 = vrot.lane.b32.xlu1 %v490_v34, %s986_s29 }
  0xab   : > { %452 = vrot.lane.b32.xlu1 %v449_v35, %s987_s30 }
 0x105   : > { %v387_v36 = vpop.permute.xlu1 %386 }
 0x106   : > { %396 = vst.msk [vmem:[#allocation2] sm:$0xff] %vm395_vm3, %v387_v36 }
 0x109   : > { %v389_v37 = vpop.permute.xlu1 %388 }
 0x10a   : > { %v1115_v38 = vsel %vm390_vm4, %v387_v36, %v389_v37  ;;  %398 = vst.msk [vmem:[#allocation2 + $0x10] sm:$0xff] %vm390_vm4, %v389_v37 }
 0x10d   : > { %v1117_v39 = vld [vmem:[#allocation2] sm:$0xff]  ;;  %v655_v40 = vpop.permute.xlu1 %654 }
 0x10e   : > { %626 = vrot.lane.b32.xlu1 %v1117_v39, %s990_s16  ;;  %v660_v48 = vmul.f32 %v653_v41, %v1117_v39  ;;  %v601_v51 = vmul.f32 %v593_v44, %v1117_v39  ;;  %v560_v52 = vmul.f32 %v552_v49, %v1117_v39  ;;  %v500_v54 = vmul.f32 %v492_v53, %v1117_v39 }
 0x10f   : > { %v656_v59 = vsel %vm382_vm0, %v653_v41, %v655_v40  ;;  %v459_v8 = vmul.f32 %v1117_v39, %v451_v3  ;;  %vm471_vm0 = vcmask 1031168  }
 0x110   : > { %v661_v61 = vmul.f32 %v656_v59, %v1115_v38 }
 0x111   : > { %v1120_v42 = vld [vmem:[#allocation2 + $0x10] sm:$0xff]  ;;  %v595_v43 = vpop.permute.xlu1 %594 }
 0x112   : > { %630 = vrot.lane.b32.xlu0 %v1120_v42, %s990_s16  ;;  %529 = vrot.lane.b32.xlu1 %v1120_v42, %s991_s17  ;;  %v662_v45 = vmul.f32 %v655_v40, %v1120_v42  ;;  %v603_v47 = vmul.f32 %v1120_v42, %v595_v43  ;;  %v597_v63 = vsel %vm596_vm6, %v593_v44, %v595_v43 }
 0x113   : > { %v602_v1 = vmul.f32 %v597_v63, %v1115_v38 }
 0x115   : > { %v554_v46 = vpop.permute.xlu1 %553 }
 0x116   : > { %525 = vrot.lane.b32.xlu0 %v1117_v39, %s991_s17  ;;  %628 = vrot.lane.b32.xlu1 %v1115_v38, %s990_s16  ;;  %v562_v55 = vmul.f32 %v1120_v42, %v554_v46  ;;  %v556_v60 = vsel %vm555_vm5, %v552_v49, %v554_v46 }
 0x117   : > { %v561_v62 = vmul.f32 %v556_v60, %v1115_v38  ;;  %v679_v60 = vld [vmem:[%s1185_s6] sm:$0xff] }
 0x119   : > { %v494_v50 = vpop.permute.xlu1 %493 }
 0x11a   : > { %527 = vrot.lane.b32.xlu0 %v1115_v38, %s991_s17  ;;  %670 = vrot.lane.b32.xlu1 %v662_v45, %s992_s18  ;;  %v502_v57 = vmul.f32 %v1120_v42, %v494_v50  ;;  %v496_v0 = vsel %vm495_vm7, %v492_v53, %v494_v50  ;;  %s353_s17 = scalar_lea.vmem %s1188_s9, %s1096_s10 }
 0x11b   : > { %v501_v2 = vmul.f32 %v496_v0, %v1115_v38 }
 0x11d   : > { %v453_v56 = vpop.permute.xlu1 %452 }
 0x11e   : > { %666 = vrot.lane.b32.xlu0 %v660_v48, %s992_s18  ;;  %611 = vrot.lane.b32.xlu1 %v603_v47, %s993_s19  ;;  %v461_v58 = vmul.f32 %v1120_v42, %v453_v56  ;;  %v455_v9 = vsel %vm454_vm8, %v451_v3, %v453_v56  ;;  %v401_v47 = vld [vmem:[%s1184_s5] ss:$2 sm:$0x3] }
 0x11f   : > { %v460_v10 = vmul.f32 %v455_v9, %v1115_v38 }
 0x122   : > { %607 = vrot.lane.b32.xlu0 %v601_v51, %s993_s19  ;;  %566 = vrot.lane.b32.xlu1 %v560_v52, %s994_s20  ;;  %v410_v52 = vrot.slane %v401_v47, %v1103_v29  ;;  %v771_v29 = vpop.f32.mrf.mxu0 }
 0x124   : > { %v773_v63 = vpop.f32.mrf.mxu0 }
 0x126   : > { %506 = vrot.lane.b32.xlu1 %v500_v54, %s995_s21  ;;  %570 = vrot.lane.b32.xlu0 %v562_v55, %s994_s20  ;;  %v406_v54 = vrot.slane %v401_v47, %v1068_v6 }
 0x128   : > { %v413_v59 = vmul.f32 %v1117_v39, %v406_v54 }
 0x12a   : > { %510 = vrot.lane.b32.xlu0 %v502_v57, %s995_s21  ;;  %469 = vrot.lane.b32.xlu1 %v461_v58, %s996_s22  ;;  %v414_v58 = vmul.f32 %v410_v52, %v1115_v38 }
 0x12e   : > { %668 = vrot.lane.b32.xlu0 %v661_v61, %s992_s18  ;;  %568 = vrot.lane.b32.xlu1 %v561_v62, %s994_s20 }
 0x132   : > { %609 = vrot.lane.b32.xlu0 %v602_v1, %s993_s19  ;;  %508 = vrot.lane.b32.xlu1 %v501_v2, %s995_s21 }
 0x136   : > { %465 = vrot.lane.b32.xlu0 %v459_v8, %s996_s22  ;;  %425 = vrot.lane.b32.xlu1 %v1115_v38, %s997_s28 }
 0x13a   : > { %423 = vrot.lane.b32.xlu1 %v1117_v39, %s997_s28  ;;  %467 = vrot.lane.b32.xlu0 %v460_v10, %s996_s22 }
 0x13e   : > { %427 = vrot.lane.b32.xlu0 %v1120_v42, %s997_s28 }
 0x142   : > { %854 = vperm.xlu0 %973, %v851_v11  }
 0x180   : > { %v627_v12 = vpop.permute.xlu1 %626 }
 0x184   : > { %v631_v13 = vpop.permute.xlu0 %630  ;;  %v530_v14 = vpop.permute.xlu1 %529 }
 0x188   : > { %v526_v15 = vpop.permute.xlu0 %525  ;;  %v629_v16 = vpop.permute.xlu1 %628 }
 0x189   : > { %v634_v32 = vsel %vm632_vm11, %v629_v16, %v631_v13  ;;  %v633_v35 = vsel %vm632_vm11, %v627_v12, %v629_v16 }
 0x18c   : > { %v528_v17 = vpop.permute.xlu0 %527  ;;  %v671_v18 = vpop.permute.xlu1 %670 }
 0x18d   : > { %v533_v44 = vsel %vm531_vm14, %v528_v17, %v530_v14  ;;  %v532_v45 = vsel %vm531_vm14, %v526_v15, %v528_v17 }
 0x190   : > { %v667_v19 = vpop.permute.xlu0 %666  ;;  %v612_v20 = vpop.permute.xlu1 %611 }
 0x194   : > { %v608_v21 = vpop.permute.xlu0 %607  ;;  %v567_v22 = vpop.permute.xlu1 %566 }
 0x198   : > { %v571_v23 = vpop.permute.xlu0 %570  ;;  %v507_v24 = vpop.permute.xlu1 %506 }
 0x19c   : > { %v511_v25 = vpop.permute.xlu0 %510  ;;  %v470_v26 = vpop.permute.xlu1 %469 }
 0x1a0   : > { %v669_v27 = vpop.permute.xlu0 %668  ;;  %v569_v28 = vpop.permute.xlu1 %568 }
 0x1a1   : > { %v674_v30 = vsel %vm672_vm10, %v669_v27, %v671_v18  ;;  %v673_v31 = vsel %vm672_vm10, %v667_v19, %v669_v27  ;;  %v574_v40 = vsel %vm572_vm13, %v569_v28, %v571_v23  ;;  %v573_v42 = vsel %vm572_vm13, %v567_v22, %v569_v28 }
 0x1a2   : > { %794 = vmatprep.subr.mxu1 %v674_v30 }
 0x1a3   : > { %795 = vmatpush1.msra.mxu1 %v673_v31 }
 0x1a4   : > { %v610_v33 = vpop.permute.xlu0 %609  ;;  %796 = vmatprep.subr.mxu1 %v634_v32  ;;  %v509_v34 = vpop.permute.xlu1 %508 }
 0x1a5   : > { %797 = vmatpush1.msra.mxu1 %v633_v35  ;;  %v615_v36 = vsel %vm613_vm12, %v610_v33, %v612_v20  ;;  %v614_v37 = vsel %vm613_vm12, %v608_v21, %v610_v33  ;;  %v514_v46 = vsel %vm512_vm15, %v509_v34, %v511_v25  ;;  %v513_v49 = vsel %vm512_vm15, %v507_v24, %v509_v34 }
 0x1a6   : > { %798 = vmatprep.subr.mxu1 %v615_v36 }
 0x1a7   : > { %799 = vmatpush1.msra.mxu1 %v614_v37 }
 0x1a8   : > { %v466_v41 = vpop.permute.xlu0 %465  ;;  %800 = vmatprep.subr.mxu1 %v574_v40  ;;  %v426_v43 = vpop.permute.xlu1 %425 }
 0x1a9   : > { %801 = vmatpush1.msra.mxu1 %v573_v42 }
 0x1aa   : > { %802 = vmatprep.subr.mxu1 %v533_v44 }
 0x1ab   : > { %803 = vmatpush1.msra.mxu1 %v532_v45 }
 0x1ac   : > { %v468_v48 = vpop.permute.xlu0 %467  ;;  %804 = vmatprep.subr.mxu1 %v514_v46  ;;  %v424_v53 = vpop.permute.xlu1 %423 }
 0x1ad   : > { %805 = vmatpush1.msra.mxu1 %v513_v49  ;;  %v473_v50 = vsel %vm471_vm0, %v468_v48, %v470_v26  ;;  %v472_v51 = vsel %vm471_vm0, %v466_v41, %v468_v48  ;;  %v430_v57 = vsel %vm429_vm1, %v424_v53, %v426_v43 }
 0x1ae   : > { %806 = vmatprep.subr.mxu1 %v473_v50 }
 0x1af   : > { %807 = vmatpush1.msra.mxu1 %v472_v51 }
 0x1b0   : > { %v428_v55 = vpop.permute.xlu0 %427 }
 0x1b1   : > { %v431_v56 = vsel %vm429_vm1, %v426_v43, %v428_v55 }
 0x1b2   : > { %808 = vmatprep.subr.mxu1 %v431_v56 }
 0x1b3   : > { %809 = vmatpush1.msra.mxu1 %v430_v57 }
 0x1b4   : > { %810 = vmatprep.subr.mxu1 %v414_v58 }
 0x1b5   : > { %811 = vmatpush1.msra.mxu1 %v413_v59 }
 0x1b6   : > { %943 = vmatmul.mubr.msk.f32.vlgmr.msra.gmra.mxu1 %vm776_vm2, %v679_v60 }
 0x1bd   : > { %v855_v61 = vpop.permute.xlu0 %854 }
 0x276   : > { %v846_v6 = vpop.f32.mrf.mxu1 }
 0x277   : > { %v847_v62 = vadd.f32 %v846_v6, %v771_v29 }
 0x278   : > { %v848_v38 = vpop.f32.mrf.mxu1 }
 0x279   : > { %v857_v0 = vadd.f32 %v855_v61, %v847_v62  ;;  %v849_v39 = vadd.f32 %v848_v38, %v773_v63 }
 0x27b   : > { %859 = vst [vmem:[%s353_s17] sm:$0xff] %v857_v0  ;;  %v858_v1 = vadd.f32 %v855_v61, %v849_v39 }
 0x27d   : > { %860 = vst [vmem:[%s353_s17 + $0x8] sm:$0xff] %v858_v1 }
 0x27e PF: > { %s20_s11 = sadd.s32 1, %s980_s11  }
 0x27f   : > { %p17_p4 = scmp.ge.s32.totalorder %s20_s11, 4  }
 0x281   :  { %19 = sbr.rel (!%p17_p4) target bundleno = 2 (0x2), region = 90 }

</bundles_post_ra>
